<compile_context>
chip_gen: v7x
topology: tpu7x:2x2x1
jax: 0.10.0
libtpu: 0.0.40
codegen_flags: <defaults>
</compile_context>

<pallas_src>
import functools

import jax
import jax.numpy as jnp
from jax.experimental import pallas as pl
from jax.experimental.pallas import tpu as pltpu

HIDDEN = 32
OUT = 5
NUM_LAYERS = 3


def lstm_kernel(
    x_ref,                                   # (T*Bp, IN)   f32
    wih0_ref, whh0_ref, b0_ref,              # (IN, 4H) bf16, (H, 4H) bf16, (1, 4H) f32
    wih1_ref, whh1_ref, b1_ref,              # (H, 4H) bf16,  (H, 4H) bf16, (1, 4H) f32
    wih2_ref, whh2_ref, b2_ref,
    wff_ref, bff_ref,                        # (H, OUT) bf16, (1, OUT) f32
    out_ref,                                 # (T*Bp, OUT)  f32
    *, seq_len, batch,
):
    wih_refs = (wih0_ref, wih1_ref, wih2_ref)
    whh_refs = (whh0_ref, whh1_ref, whh2_ref)
    b_refs = (b0_ref, b1_ref, b2_ref)

    Bp = batch
    H = HIDDEN

    # Layer-0 input: whole sequence, cast once to bf16 for the MXU.
    layer_in = x_ref[...].astype(jnp.bfloat16)          # (T*Bp, IN)

    for l in range(NUM_LAYERS):
        # ---- Hoisted input-side matmul for ALL timesteps (off the recurrence).
        # Weights/bias are pre-scaled by 0.5 on the i/f/o gate columns
        # (sigmoid-via-tanh), so the serial loop needs no extra scaling.
        pre = (
            jnp.dot(layer_in, wih_refs[l][...], preferred_element_type=jnp.float32)
            + b_refs[l][...]
        )                                                # (T*Bp, 4H) f32
        whh = whh_refs[l][...]                           # (H, 4H) bf16 (pre-scaled)

        h = jnp.zeros((Bp, H), jnp.float32)
        c = jnp.zeros((Bp, H), jnp.float32)
        h_steps = []

        # ---- Serial recurrence, fully unrolled (seq_len is a static int):
        # one K=32 bf16 matmul + ONE full-width tanh + tanh(c) per step.
        for t in range(seq_len):
            gates = pre[t * Bp:(t + 1) * Bp, :] + jnp.dot(
                h.astype(jnp.bfloat16), whh, preferred_element_type=jnp.float32
            )                                            # (Bp, 4H) f32
            th = jnp.tanh(gates)      # i/f/o lanes hold tanh(z/2); g lanes tanh(z)
            i_g = 0.5 * th[:, 0 * H:1 * H] + 0.5         # sigmoid(z_i)
            f_g = 0.5 * th[:, 1 * H:2 * H] + 0.5         # sigmoid(z_f)
            g_g = th[:, 2 * H:3 * H]                     # tanh(z_g)
            o_g = 0.5 * th[:, 3 * H:4 * H] + 0.5         # sigmoid(z_o)
            c = f_g * c + i_g * g_g
            h = o_g * jnp.tanh(c)
            h_steps.append(h)

        # Next layer's (or projection's) input: stacked per-step hidden states,
        # kept in registers (no VMEM scratch round-trip).
        layer_in = jnp.concatenate(h_steps, axis=0).astype(jnp.bfloat16)  # (T*Bp, H)

    # ---- Hoisted final Linear: one (T*Bp, H) @ (H, OUT) matmul + dense store.
    y = (
        jnp.dot(layer_in, wff_ref[...], preferred_element_type=jnp.float32)
        + bff_ref[...]
    )
    out_ref[...] = y.astype(out_ref.dtype)


def _gate_scale():
    # 0.5 on the i/f/o gate columns, 1.0 on the g columns
    # (sigmoid(z) = 0.5 * tanh(z/2) + 0.5).
    s = jnp.full((4 * HIDDEN,), 0.5, jnp.float32)
    return s.at[2 * HIDDEN:3 * HIDDEN].set(1.0)


def _prep_kernel_weights(params):
    """Bake the sigmoid-via-tanh 0.5 scaling into the i/f/o weight/bias columns
    and cast the MXU operands to bf16.  Pure XLA-side, outside the kernel."""
    s = _gate_scale()
    prepped = []
    for l in range(NUM_LAYERS):
        prepped += [
            (params[f"wih{l}"] * s).astype(jnp.bfloat16),        # (in_l, 4H)
            (params[f"whh{l}"] * s).astype(jnp.bfloat16),        # (H, 4H)
            (params[f"b{l}"] * s).reshape(1, 4 * HIDDEN),        # (1, 4H) f32
        ]
    prepped += [
        params["wff_t"].astype(jnp.bfloat16),                    # (H, OUT)
        params["bff"].reshape(1, OUT),                           # (1, OUT) f32
    ]
    return prepped


def nakamura_encoder_lstm(x, params):
    """x: (T, B, IN) float32. Returns (T, B, OUT), matching the PyTorch forward."""
    T, B, IN = x.shape
    Bp = ((B + 7) // 8) * 8          # pad batch to a multiple of 8 sublanes
    if Bp != B:
        x = jnp.pad(x, ((0, 0), (0, Bp - B), (0, 0)))
    x2d = x.reshape(T * Bp, IN)      # wrapper-level reshape/pad (free, XLA-side)

    def full(shape):
        return pl.BlockSpec(shape, lambda i: tuple(0 for _ in shape))

    weights = _prep_kernel_weights(params)

    in_specs = [full((T * Bp, IN))]
    in_sizes = [IN, HIDDEN, HIDDEN]
    for l in range(NUM_LAYERS):
        in_specs += [
            full((in_sizes[l], 4 * HIDDEN)),
            full((HIDDEN, 4 * HIDDEN)),
            full((1, 4 * HIDDEN)),
        ]
    in_specs += [full((HIDDEN, OUT)), full((1, OUT))]

    out2d = pl.pallas_call(
        functools.partial(lstm_kernel, seq_len=T, batch=Bp),
        out_shape=jax.ShapeDtypeStruct((T * Bp, OUT), jnp.float32),
        grid_spec=pltpu.PrefetchScalarGridSpec(
            num_scalar_prefetch=0,
            grid=(1,),   # single kernel invocation; time loop unrolled in-kernel
            in_specs=in_specs,
            out_specs=full((T * Bp, OUT)),
        ),
        compiler_params=pltpu.CompilerParams(
            dimension_semantics=("arbitrary",),
        ),
    )(x2d, *weights)

    return out2d.reshape(T, Bp, OUT)[:, :B, :]


def init_params(key, input_size):
    """Deterministic init mirroring the PyTorch module's shapes.
    PyTorch: weight_ih_l{k}: (4H, in_k), weight_hh_l{k}: (4H, H), bias_*: (4H,).
    Stored here transposed (in_k, 4H) / (H, 4H), with b = b_ih + b_hh."""
    bound = 1.0 / jnp.sqrt(HIDDEN)
    keys = jax.random.split(key, 20)
    ki = iter(keys)

    def u(shape):
        return jax.random.uniform(next(ki), shape, jnp.float32, -bound, bound)

    params = {}
    in_sizes = [input_size, HIDDEN, HIDDEN]
    for l in range(NUM_LAYERS):
        w_ih = u((4 * HIDDEN, in_sizes[l]))
        w_hh = u((4 * HIDDEN, HIDDEN))
        b_ih = u((4 * HIDDEN,))
        b_hh = u((4 * HIDDEN,))
        params[f"wih{l}"] = w_ih.T                    # (in_k, 4H)
        params[f"whh{l}"] = w_hh.T                    # (H, 4H)
        params[f"b{l}"] = b_ih + b_hh                 # (4H,)
    w_ff = u((OUT, HIDDEN))
    b_ff = u((OUT,))
    params["wff_t"] = w_ff.T                          # (H, OUT)
    params["bff"] = b_ff                              # (OUT,)
    return params


def reference_forward(x, params):
    """Pure-JAX f32 reference (lax.scan) with standard LSTM math, for verification."""
    H = HIDDEN

    def run_layer(x_seq, wih, whh, b):
        B = x_seq.shape[1]

        def step(carry, x_t):
            h, c = carry
            gates = x_t @ wih + h @ whh + b
            i = jax.nn.sigmoid(gates[:, 0 * H:1 * H])
            f = jax.nn.sigmoid(gates[:, 1 * H:2 * H])
            g = jnp.tanh(gates[:, 2 * H:3 * H])
            o = jax.nn.sigmoid(gates[:, 3 * H:4 * H])
            c = f * c + i * g
            h = o * jnp.tanh(c)
            return (h, c), h

        init = (jnp.zeros((B, H), jnp.float32), jnp.zeros((B, H), jnp.float32))
        _, hs = jax.lax.scan(step, init, x_seq)
        return hs

    h = x
    for l in range(NUM_LAYERS):
        h = run_layer(h, params[f"wih{l}"], params[f"whh{l}"], params[f"b{l}"])
    return h @ params["wff_t"] + params["bff"]


if __name__ == "__main__":
    T, B, IN = 8, 4, 16
    key = jax.random.PRNGKey(0)
    k_x, k_p = jax.random.split(key)
    x = jax.random.normal(k_x, (T, B, IN), jnp.float32)
    params = init_params(k_p, IN)

    out = nakamura_encoder_lstm(x, params)
    out = jax.block_until_ready(out)

    ref = reference_forward(x, params)
    assert out.shape == (T, B, OUT), out.shape
    # Tolerance relaxed vs f32 reference because MXU operands are bf16
    # (f32 accumulation, f32 gate/state math).
    max_err = float(jnp.max(jnp.abs(out - ref)))
    assert max_err < 3e-2, max_err

    print("KERNEL_OK")
</pallas_src>

<mosaic_0001>
module attributes {stable_mosaic.version = 11 : i64} {
  func.func @lstm_kernel(%arg0: i32, %arg1: memref<64x16xf32, #tpu.memory_space<vmem>>, %arg2: memref<16x128xbf16, #tpu.memory_space<vmem>>, %arg3: memref<32x128xbf16, #tpu.memory_space<vmem>>, %arg4: memref<1x128xf32, #tpu.memory_space<vmem>>, %arg5: memref<32x128xbf16, #tpu.memory_space<vmem>>, %arg6: memref<32x128xbf16, #tpu.memory_space<vmem>>, %arg7: memref<1x128xf32, #tpu.memory_space<vmem>>, %arg8: memref<32x128xbf16, #tpu.memory_space<vmem>>, %arg9: memref<32x128xbf16, #tpu.memory_space<vmem>>, %arg10: memref<1x128xf32, #tpu.memory_space<vmem>>, %arg11: memref<32x5xbf16, #tpu.memory_space<vmem>>, %arg12: memref<1x5xf32, #tpu.memory_space<vmem>>, %arg13: memref<64x5xf32, #tpu.memory_space<vmem>>) attributes {dimension_semantics = [#tpu.dimension_semantics<arbitrary>], iteration_bounds = array<i64: 1>, scalar_prefetch = 0 : i64, scratch_operands = 0 : i64, tpu.core_type = #tpu.core_type<tc>, window_params = [{pipeline_mode = #tpu.pipeline_mode<synchronous>, transform_indices = @transform_0, window_bounds = array<i64: 64, 16>}, {pipeline_mode = #tpu.pipeline_mode<synchronous>, transform_indices = @transform_1, window_bounds = array<i64: 16, 128>}, {pipeline_mode = #tpu.pipeline_mode<synchronous>, transform_indices = @transform_2, window_bounds = array<i64: 32, 128>}, {pipeline_mode = #tpu.pipeline_mode<synchronous>, transform_indices = @transform_3, window_bounds = array<i64: 1, 128>}, {pipeline_mode = #tpu.pipeline_mode<synchronous>, transform_indices = @transform_4, window_bounds = array<i64: 32, 128>}, {pipeline_mode = #tpu.pipeline_mode<synchronous>, transform_indices = @transform_5, window_bounds = array<i64: 32, 128>}, {pipeline_mode = #tpu.pipeline_mode<synchronous>, transform_indices = @transform_6, window_bounds = array<i64: 1, 128>}, {pipeline_mode = #tpu.pipeline_mode<synchronous>, transform_indices = @transform_7, window_bounds = array<i64: 32, 128>}, {pipeline_mode = #tpu.pipeline_mode<synchronous>, transform_indices = @transform_8, window_bounds = array<i64: 32, 128>}, {pipeline_mode = #tpu.pipeline_mode<synchronous>, transform_indices = @transform_9, window_bounds = array<i64: 1, 128>}, {pipeline_mode = #tpu.pipeline_mode<synchronous>, transform_indices = @transform_10, window_bounds = array<i64: 32, 5>}, {pipeline_mode = #tpu.pipeline_mode<synchronous>, transform_indices = @transform_11, window_bounds = array<i64: 1, 5>}, {pipeline_mode = #tpu.pipeline_mode<synchronous>, transform_indices = @transform_12, window_bounds = array<i64: 64, 5>}]} {
    %c0 = arith.constant 0 : index
    %c0_0 = arith.constant 0 : index
    %0 = vector.load %arg1[%c0, %c0_0] : memref<64x16xf32, #tpu.memory_space<vmem>>, vector<64x16xf32>
    %1 = arith.truncf %0 : vector<64x16xf32> to vector<64x16xbf16>
    %c0_1 = arith.constant 0 : index
    %c0_2 = arith.constant 0 : index
    %2 = vector.load %arg2[%c0_1, %c0_2] : memref<16x128xbf16, #tpu.memory_space<vmem>>, vector<16x128xbf16>
    %cst = arith.constant dense<0.000000e+00> : vector<64x128xf32>
    %3 = tpu.matmul %1, %2, %cst {dimension_numbers = #tpu.dot_dimension_numbers<[1], [0], [0], [1], [0, 0, 1, 1], [], []>} : vector<64x16xbf16>, vector<16x128xbf16>, vector<64x128xf32> -> vector<64x128xf32>
    %c0_3 = arith.constant 0 : index
    %c0_4 = arith.constant 0 : index
    %4 = vector.load %arg4[%c0_3, %c0_4] : memref<1x128xf32, #tpu.memory_space<vmem>>, vector<1x128xf32>
    %5 = vector.broadcast %4 : vector<1x128xf32> to vector<64x128xf32>
    %6 = arith.addf %3, %5 : vector<64x128xf32>
    %c0_5 = arith.constant 0 : index
    %c0_6 = arith.constant 0 : index
    %7 = vector.load %arg3[%c0_5, %c0_6] : memref<32x128xbf16, #tpu.memory_space<vmem>>, vector<32x128xbf16>
    %cst_7 = arith.constant 0.000000e+00 : f32
    %8 = vector.broadcast %cst_7 : f32 to vector<8x32xf32>
    %cst_8 = arith.constant 0.000000e+00 : f32
    %9 = vector.broadcast %cst_8 : f32 to vector<8x32xf32>
    %10 = vector.extract_strided_slice %6 {offsets = [0, 0], sizes = [8, 128], strides = [1, 1]} : vector<64x128xf32> to vector<8x128xf32>
    %11 = arith.truncf %8 : vector<8x32xf32> to vector<8x32xbf16>
    %cst_9 = arith.constant dense<0.000000e+00> : vector<8x128xf32>
    %12 = tpu.matmul %11, %7, %cst_9 {dimension_numbers = #tpu.dot_dimension_numbers<[1], [0], [0], [1], [0, 0, 1, 1], [], []>} : vector<8x32xbf16>, vector<32x128xbf16>, vector<8x128xf32> -> vector<8x128xf32>
    %13 = arith.addf %10, %12 : vector<8x128xf32>
    %14 = math.tanh %13 : vector<8x128xf32>
    %15 = vector.extract_strided_slice %14 {offsets = [0, 0], sizes = [8, 32], strides = [1, 1]} : vector<8x128xf32> to vector<8x32xf32>
    %cst_10 = arith.constant 5.000000e-01 : f32
    %16 = vector.broadcast %cst_10 : f32 to vector<8x32xf32>
    %17 = arith.mulf %16, %15 : vector<8x32xf32>
    %cst_11 = arith.constant 5.000000e-01 : f32
    %18 = vector.broadcast %cst_11 : f32 to vector<8x32xf32>
    %19 = arith.addf %17, %18 : vector<8x32xf32>
    %20 = vector.extract_strided_slice %14 {offsets = [0, 32], sizes = [8, 32], strides = [1, 1]} : vector<8x128xf32> to vector<8x32xf32>
    %cst_12 = arith.constant 5.000000e-01 : f32
    %21 = vector.broadcast %cst_12 : f32 to vector<8x32xf32>
    %22 = arith.mulf %21, %20 : vector<8x32xf32>
    %cst_13 = arith.constant 5.000000e-01 : f32
    %23 = vector.broadcast %cst_13 : f32 to vector<8x32xf32>
    %24 = arith.addf %22, %23 : vector<8x32xf32>
    %25 = vector.extract_strided_slice %14 {offsets = [0, 64], sizes = [8, 32], strides = [1, 1]} : vector<8x128xf32> to vector<8x32xf32>
    %26 = vector.extract_strided_slice %14 {offsets = [0, 96], sizes = [8, 32], strides = [1, 1]} : vector<8x128xf32> to vector<8x32xf32>
    %cst_14 = arith.constant 5.000000e-01 : f32
    %27 = vector.broadcast %cst_14 : f32 to vector<8x32xf32>
    %28 = arith.mulf %27, %26 : vector<8x32xf32>
    %cst_15 = arith.constant 5.000000e-01 : f32
    %29 = vector.broadcast %cst_15 : f32 to vector<8x32xf32>
    %30 = arith.addf %28, %29 : vector<8x32xf32>
    %31 = arith.mulf %24, %9 : vector<8x32xf32>
    %32 = arith.mulf %19, %25 : vector<8x32xf32>
    %33 = arith.addf %31, %32 : vector<8x32xf32>
    %34 = math.tanh %33 : vector<8x32xf32>
    %35 = arith.mulf %30, %34 : vector<8x32xf32>
    %36 = vector.extract_strided_slice %6 {offsets = [8, 0], sizes = [8, 128], strides = [1, 1]} : vector<64x128xf32> to vector<8x128xf32>
    %37 = arith.truncf %35 : vector<8x32xf32> to vector<8x32xbf16>
    %cst_16 = arith.constant dense<0.000000e+00> : vector<8x128xf32>
    %38 = tpu.matmul %37, %7, %cst_16 {dimension_numbers = #tpu.dot_dimension_numbers<[1], [0], [0], [1], [0, 0, 1, 1], [], []>} : vector<8x32xbf16>, vector<32x128xbf16>, vector<8x128xf32> -> vector<8x128xf32>
    %39 = arith.addf %36, %38 : vector<8x128xf32>
    %40 = math.tanh %39 : vector<8x128xf32>
    %41 = vector.extract_strided_slice %40 {offsets = [0, 0], sizes = [8, 32], strides = [1, 1]} : vector<8x128xf32> to vector<8x32xf32>
    %cst_17 = arith.constant 5.000000e-01 : f32
    %42 = vector.broadcast %cst_17 : f32 to vector<8x32xf32>
    %43 = arith.mulf %42, %41 : vector<8x32xf32>
    %cst_18 = arith.constant 5.000000e-01 : f32
    %44 = vector.broadcast %cst_18 : f32 to vector<8x32xf32>
    %45 = arith.addf %43, %44 : vector<8x32xf32>
    %46 = vector.extract_strided_slice %40 {offsets = [0, 32], sizes = [8, 32], strides = [1, 1]} : vector<8x128xf32> to vector<8x32xf32>
    %cst_19 = arith.constant 5.000000e-01 : f32
    %47 = vector.broadcast %cst_19 : f32 to vector<8x32xf32>
    %48 = arith.mulf %47, %46 : vector<8x32xf32>
    %cst_20 = arith.constant 5.000000e-01 : f32
    %49 = vector.broadcast %cst_20 : f32 to vector<8x32xf32>
    %50 = arith.addf %48, %49 : vector<8x32xf32>
    %51 = vector.extract_strided_slice %40 {offsets = [0, 64], sizes = [8, 32], strides = [1, 1]} : vector<8x128xf32> to vector<8x32xf32>
    %52 = vector.extract_strided_slice %40 {offsets = [0, 96], sizes = [8, 32], strides = [1, 1]} : vector<8x128xf32> to vector<8x32xf32>
    %cst_21 = arith.constant 5.000000e-01 : f32
    %53 = vector.broadcast %cst_21 : f32 to vector<8x32xf32>
    %54 = arith.mulf %53, %52 : vector<8x32xf32>
    %cst_22 = arith.constant 5.000000e-01 : f32
    %55 = vector.broadcast %cst_22 : f32 to vector<8x32xf32>
    %56 = arith.addf %54, %55 : vector<8x32xf32>
    %57 = arith.mulf %50, %33 : vector<8x32xf32>
    %58 = arith.mulf %45, %51 : vector<8x32xf32>
    %59 = arith.addf %57, %58 : vector<8x32xf32>
    %60 = math.tanh %59 : vector<8x32xf32>
    %61 = arith.mulf %56, %60 : vector<8x32xf32>
    %62 = vector.extract_strided_slice %6 {offsets = [16, 0], sizes = [8, 128], strides = [1, 1]} : vector<64x128xf32> to vector<8x128xf32>
    %63 = arith.truncf %61 : vector<8x32xf32> to vector<8x32xbf16>
    %cst_23 = arith.constant dense<0.000000e+00> : vector<8x128xf32>
    %64 = tpu.matmul %63, %7, %cst_23 {dimension_numbers = #tpu.dot_dimension_numbers<[1], [0], [0], [1], [0, 0, 1, 1], [], []>} : vector<8x32xbf16>, vector<32x128xbf16>, vector<8x128xf32> -> vector<8x128xf32>
    %65 = arith.addf %62, %64 : vector<8x128xf32>
    %66 = math.tanh %65 : vector<8x128xf32>
    %67 = vector.extract_strided_slice %66 {offsets = [0, 0], sizes = [8, 32], strides = [1, 1]} : vector<8x128xf32> to vector<8x32xf32>
    %cst_24 = arith.constant 5.000000e-01 : f32
    %68 = vector.broadcast %cst_24 : f32 to vector<8x32xf32>
    %69 = arith.mulf %68, %67 : vector<8x32xf32>
    %cst_25 = arith.constant 5.000000e-01 : f32
    %70 = vector.broadcast %cst_25 : f32 to vector<8x32xf32>
    %71 = arith.addf %69, %70 : vector<8x32xf32>
    %72 = vector.extract_strided_slice %66 {offsets = [0, 32], sizes = [8, 32], strides = [1, 1]} : vector<8x128xf32> to vector<8x32xf32>
    %cst_26 = arith.constant 5.000000e-01 : f32
    %73 = vector.broadcast %cst_26 : f32 to vector<8x32xf32>
    %74 = arith.mulf %73, %72 : vector<8x32xf32>
    %cst_27 = arith.constant 5.000000e-01 : f32
    %75 = vector.broadcast %cst_27 : f32 to vector<8x32xf32>
    %76 = arith.addf %74, %75 : vector<8x32xf32>
    %77 = vector.extract_strided_slice %66 {offsets = [0, 64], sizes = [8, 32], strides = [1, 1]} : vector<8x128xf32> to vector<8x32xf32>
    %78 = vector.extract_strided_slice %66 {offsets = [0, 96], sizes = [8, 32], strides = [1, 1]} : vector<8x128xf32> to vector<8x32xf32>
    %cst_28 = arith.constant 5.000000e-01 : f32
    %79 = vector.broadcast %cst_28 : f32 to vector<8x32xf32>
    %80 = arith.mulf %79, %78 : vector<8x32xf32>
    %cst_29 = arith.constant 5.000000e-01 : f32
    %81 = vector.broadcast %cst_29 : f32 to vector<8x32xf32>
    %82 = arith.addf %80, %81 : vector<8x32xf32>
    %83 = arith.mulf %76, %59 : vector<8x32xf32>
    %84 = arith.mulf %71, %77 : vector<8x32xf32>
    %85 = arith.addf %83, %84 : vector<8x32xf32>
    %86 = math.tanh %85 : vector<8x32xf32>
    %87 = arith.mulf %82, %86 : vector<8x32xf32>
    %88 = vector.extract_strided_slice %6 {offsets = [24, 0], sizes = [8, 128], strides = [1, 1]} : vector<64x128xf32> to vector<8x128xf32>
    %89 = arith.truncf %87 : vector<8x32xf32> to vector<8x32xbf16>
    %cst_30 = arith.constant dense<0.000000e+00> : vector<8x128xf32>
    %90 = tpu.matmul %89, %7, %cst_30 {dimension_numbers = #tpu.dot_dimension_numbers<[1], [0], [0], [1], [0, 0, 1, 1], [], []>} : vector<8x32xbf16>, vector<32x128xbf16>, vector<8x128xf32> -> vector<8x128xf32>
    %91 = arith.addf %88, %90 : vector<8x128xf32>
    %92 = math.tanh %91 : vector<8x128xf32>
    %93 = vector.extract_strided_slice %92 {offsets = [0, 0], sizes = [8, 32], strides = [1, 1]} : vector<8x128xf32> to vector<8x32xf32>
    %cst_31 = arith.constant 5.000000e-01 : f32
    %94 = vector.broadcast %cst_31 : f32 to vector<8x32xf32>
    %95 = arith.mulf %94, %93 : vector<8x32xf32>
    %cst_32 = arith.constant 5.000000e-01 : f32
    %96 = vector.broadcast %cst_32 : f32 to vector<8x32xf32>
    %97 = arith.addf %95, %96 : vector<8x32xf32>
    %98 = vector.extract_strided_slice %92 {offsets = [0, 32], sizes = [8, 32], strides = [1, 1]} : vector<8x128xf32> to vector<8x32xf32>
    %cst_33 = arith.constant 5.000000e-01 : f32
    %99 = vector.broadcast %cst_33 : f32 to vector<8x32xf32>
    %100 = arith.mulf %99, %98 : vector<8x32xf32>
    %cst_34 = arith.constant 5.000000e-01 : f32
    %101 = vector.broadcast %cst_34 : f32 to vector<8x32xf32>
    %102 = arith.addf %100, %101 : vector<8x32xf32>
    %103 = vector.extract_strided_slice %92 {offsets = [0, 64], sizes = [8, 32], strides = [1, 1]} : vector<8x128xf32> to vector<8x32xf32>
    %104 = vector.extract_strided_slice %92 {offsets = [0, 96], sizes = [8, 32], strides = [1, 1]} : vector<8x128xf32> to vector<8x32xf32>
    %cst_35 = arith.constant 5.000000e-01 : f32
    %105 = vector.broadcast %cst_35 : f32 to vector<8x32xf32>
    %106 = arith.mulf %105, %104 : vector<8x32xf32>
    %cst_36 = arith.constant 5.000000e-01 : f32
    %107 = vector.broadcast %cst_36 : f32 to vector<8x32xf32>
    %108 = arith.addf %106, %107 : vector<8x32xf32>
    %109 = arith.mulf %102, %85 : vector<8x32xf32>
    %110 = arith.mulf %97, %103 : vector<8x32xf32>
    %111 = arith.addf %109, %110 : vector<8x32xf32>
    %112 = math.tanh %111 : vector<8x32xf32>
    %113 = arith.mulf %108, %112 : vector<8x32xf32>
    %114 = vector.extract_strided_slice %6 {offsets = [32, 0], sizes = [8, 128], strides = [1, 1]} : vector<64x128xf32> to vector<8x128xf32>
    %115 = arith.truncf %113 : vector<8x32xf32> to vector<8x32xbf16>
    %cst_37 = arith.constant dense<0.000000e+00> : vector<8x128xf32>
    %116 = tpu.matmul %115, %7, %cst_37 {dimension_numbers = #tpu.dot_dimension_numbers<[1], [0], [0], [1], [0, 0, 1, 1], [], []>} : vector<8x32xbf16>, vector<32x128xbf16>, vector<8x128xf32> -> vector<8x128xf32>
    %117 = arith.addf %114, %116 : vector<8x128xf32>
    %118 = math.tanh %117 : vector<8x128xf32>
    %119 = vector.extract_strided_slice %118 {offsets = [0, 0], sizes = [8, 32], strides = [1, 1]} : vector<8x128xf32> to vector<8x32xf32>
    %cst_38 = arith.constant 5.000000e-01 : f32
    %120 = vector.broadcast %cst_38 : f32 to vector<8x32xf32>
    %121 = arith.mulf %120, %119 : vector<8x32xf32>
    %cst_39 = arith.constant 5.000000e-01 : f32
    %122 = vector.broadcast %cst_39 : f32 to vector<8x32xf32>
    %123 = arith.addf %121, %122 : vector<8x32xf32>
    %124 = vector.extract_strided_slice %118 {offsets = [0, 32], sizes = [8, 32], strides = [1, 1]} : vector<8x128xf32> to vector<8x32xf32>
    %cst_40 = arith.constant 5.000000e-01 : f32
    %125 = vector.broadcast %cst_40 : f32 to vector<8x32xf32>
    %126 = arith.mulf %125, %124 : vector<8x32xf32>
    %cst_41 = arith.constant 5.000000e-01 : f32
    %127 = vector.broadcast %cst_41 : f32 to vector<8x32xf32>
    %128 = arith.addf %126, %127 : vector<8x32xf32>
    %129 = vector.extract_strided_slice %118 {offsets = [0, 64], sizes = [8, 32], strides = [1, 1]} : vector<8x128xf32> to vector<8x32xf32>
    %130 = vector.extract_strided_slice %118 {offsets = [0, 96], sizes = [8, 32], strides = [1, 1]} : vector<8x128xf32> to vector<8x32xf32>
    %cst_42 = arith.constant 5.000000e-01 : f32
    %131 = vector.broadcast %cst_42 : f32 to vector<8x32xf32>
    %132 = arith.mulf %131, %130 : vector<8x32xf32>
    %cst_43 = arith.constant 5.000000e-01 : f32
    %133 = vector.broadcast %cst_43 : f32 to vector<8x32xf32>
    %134 = arith.addf %132, %133 : vector<8x32xf32>
    %135 = arith.mulf %128, %111 : vector<8x32xf32>
    %136 = arith.mulf %123, %129 : vector<8x32xf32>
    %137 = arith.addf %135, %136 : vector<8x32xf32>
    %138 = math.tanh %137 : vector<8x32xf32>
    %139 = arith.mulf %134, %138 : vector<8x32xf32>
    %140 = vector.extract_strided_slice %6 {offsets = [40, 0], sizes = [8, 128], strides = [1, 1]} : vector<64x128xf32> to vector<8x128xf32>
    %141 = arith.truncf %139 : vector<8x32xf32> to vector<8x32xbf16>
    %cst_44 = arith.constant dense<0.000000e+00> : vector<8x128xf32>
    %142 = tpu.matmul %141, %7, %cst_44 {dimension_numbers = #tpu.dot_dimension_numbers<[1], [0], [0], [1], [0, 0, 1, 1], [], []>} : vector<8x32xbf16>, vector<32x128xbf16>, vector<8x128xf32> -> vector<8x128xf32>
    %143 = arith.addf %140, %142 : vector<8x128xf32>
    %144 = math.tanh %143 : vector<8x128xf32>
    %145 = vector.extract_strided_slice %144 {offsets = [0, 0], sizes = [8, 32], strides = [1, 1]} : vector<8x128xf32> to vector<8x32xf32>
    %cst_45 = arith.constant 5.000000e-01 : f32
    %146 = vector.broadcast %cst_45 : f32 to vector<8x32xf32>
    %147 = arith.mulf %146, %145 : vector<8x32xf32>
    %cst_46 = arith.constant 5.000000e-01 : f32
    %148 = vector.broadcast %cst_46 : f32 to vector<8x32xf32>
    %149 = arith.addf %147, %148 : vector<8x32xf32>
    %150 = vector.extract_strided_slice %144 {offsets = [0, 32], sizes = [8, 32], strides = [1, 1]} : vector<8x128xf32> to vector<8x32xf32>
    %cst_47 = arith.constant 5.000000e-01 : f32
    %151 = vector.broadcast %cst_47 : f32 to vector<8x32xf32>
    %152 = arith.mulf %151, %150 : vector<8x32xf32>
    %cst_48 = arith.constant 5.000000e-01 : f32
    %153 = vector.broadcast %cst_48 : f32 to vector<8x32xf32>
    %154 = arith.addf %152, %153 : vector<8x32xf32>
    %155 = vector.extract_strided_slice %144 {offsets = [0, 64], sizes = [8, 32], strides = [1, 1]} : vector<8x128xf32> to vector<8x32xf32>
    %156 = vector.extract_strided_slice %144 {offsets = [0, 96], sizes = [8, 32], strides = [1, 1]} : vector<8x128xf32> to vector<8x32xf32>
    %cst_49 = arith.constant 5.000000e-01 : f32
    %157 = vector.broadcast %cst_49 : f32 to vector<8x32xf32>
    %158 = arith.mulf %157, %156 : vector<8x32xf32>
    %cst_50 = arith.constant 5.000000e-01 : f32
    %159 = vector.broadcast %cst_50 : f32 to vector<8x32xf32>
    %160 = arith.addf %158, %159 : vector<8x32xf32>
    %161 = arith.mulf %154, %137 : vector<8x32xf32>
    %162 = arith.mulf %149, %155 : vector<8x32xf32>
    %163 = arith.addf %161, %162 : vector<8x32xf32>
    %164 = math.tanh %163 : vector<8x32xf32>
    %165 = arith.mulf %160, %164 : vector<8x32xf32>
    %166 = vector.extract_strided_slice %6 {offsets = [48, 0], sizes = [8, 128], strides = [1, 1]} : vector<64x128xf32> to vector<8x128xf32>
    %167 = arith.truncf %165 : vector<8x32xf32> to vector<8x32xbf16>
    %cst_51 = arith.constant dense<0.000000e+00> : vector<8x128xf32>
    %168 = tpu.matmul %167, %7, %cst_51 {dimension_numbers = #tpu.dot_dimension_numbers<[1], [0], [0], [1], [0, 0, 1, 1], [], []>} : vector<8x32xbf16>, vector<32x128xbf16>, vector<8x128xf32> -> vector<8x128xf32>
    %169 = arith.addf %166, %168 : vector<8x128xf32>
    %170 = math.tanh %169 : vector<8x128xf32>
    %171 = vector.extract_strided_slice %170 {offsets = [0, 0], sizes = [8, 32], strides = [1, 1]} : vector<8x128xf32> to vector<8x32xf32>
    %cst_52 = arith.constant 5.000000e-01 : f32
    %172 = vector.broadcast %cst_52 : f32 to vector<8x32xf32>
    %173 = arith.mulf %172, %171 : vector<8x32xf32>
    %cst_53 = arith.constant 5.000000e-01 : f32
    %174 = vector.broadcast %cst_53 : f32 to vector<8x32xf32>
    %175 = arith.addf %173, %174 : vector<8x32xf32>
    %176 = vector.extract_strided_slice %170 {offsets = [0, 32], sizes = [8, 32], strides = [1, 1]} : vector<8x128xf32> to vector<8x32xf32>
    %cst_54 = arith.constant 5.000000e-01 : f32
    %177 = vector.broadcast %cst_54 : f32 to vector<8x32xf32>
    %178 = arith.mulf %177, %176 : vector<8x32xf32>
    %cst_55 = arith.constant 5.000000e-01 : f32
    %179 = vector.broadcast %cst_55 : f32 to vector<8x32xf32>
    %180 = arith.addf %178, %179 : vector<8x32xf32>
    %181 = vector.extract_strided_slice %170 {offsets = [0, 64], sizes = [8, 32], strides = [1, 1]} : vector<8x128xf32> to vector<8x32xf32>
    %182 = vector.extract_strided_slice %170 {offsets = [0, 96], sizes = [8, 32], strides = [1, 1]} : vector<8x128xf32> to vector<8x32xf32>
    %cst_56 = arith.constant 5.000000e-01 : f32
    %183 = vector.broadcast %cst_56 : f32 to vector<8x32xf32>
    %184 = arith.mulf %183, %182 : vector<8x32xf32>
    %cst_57 = arith.constant 5.000000e-01 : f32
    %185 = vector.broadcast %cst_57 : f32 to vector<8x32xf32>
    %186 = arith.addf %184, %185 : vector<8x32xf32>
    %187 = arith.mulf %180, %163 : vector<8x32xf32>
    %188 = arith.mulf %175, %181 : vector<8x32xf32>
    %189 = arith.addf %187, %188 : vector<8x32xf32>
    %190 = math.tanh %189 : vector<8x32xf32>
    %191 = arith.mulf %186, %190 : vector<8x32xf32>
    %192 = vector.extract_strided_slice %6 {offsets = [56, 0], sizes = [8, 128], strides = [1, 1]} : vector<64x128xf32> to vector<8x128xf32>
    %193 = arith.truncf %191 : vector<8x32xf32> to vector<8x32xbf16>
    %cst_58 = arith.constant dense<0.000000e+00> : vector<8x128xf32>
    %194 = tpu.matmul %193, %7, %cst_58 {dimension_numbers = #tpu.dot_dimension_numbers<[1], [0], [0], [1], [0, 0, 1, 1], [], []>} : vector<8x32xbf16>, vector<32x128xbf16>, vector<8x128xf32> -> vector<8x128xf32>
    %195 = arith.addf %192, %194 : vector<8x128xf32>
    %196 = math.tanh %195 : vector<8x128xf32>
    %197 = vector.extract_strided_slice %196 {offsets = [0, 0], sizes = [8, 32], strides = [1, 1]} : vector<8x128xf32> to vector<8x32xf32>
    %cst_59 = arith.constant 5.000000e-01 : f32
    %198 = vector.broadcast %cst_59 : f32 to vector<8x32xf32>
    %199 = arith.mulf %198, %197 : vector<8x32xf32>
    %cst_60 = arith.constant 5.000000e-01 : f32
    %200 = vector.broadcast %cst_60 : f32 to vector<8x32xf32>
    %201 = arith.addf %199, %200 : vector<8x32xf32>
    %202 = vector.extract_strided_slice %196 {offsets = [0, 32], sizes = [8, 32], strides = [1, 1]} : vector<8x128xf32> to vector<8x32xf32>
    %cst_61 = arith.constant 5.000000e-01 : f32
    %203 = vector.broadcast %cst_61 : f32 to vector<8x32xf32>
    %204 = arith.mulf %203, %202 : vector<8x32xf32>
    %cst_62 = arith.constant 5.000000e-01 : f32
    %205 = vector.broadcast %cst_62 : f32 to vector<8x32xf32>
    %206 = arith.addf %204, %205 : vector<8x32xf32>
    %207 = vector.extract_strided_slice %196 {offsets = [0, 64], sizes = [8, 32], strides = [1, 1]} : vector<8x128xf32> to vector<8x32xf32>
    %208 = vector.extract_strided_slice %196 {offsets = [0, 96], sizes = [8, 32], strides = [1, 1]} : vector<8x128xf32> to vector<8x32xf32>
    %cst_63 = arith.constant 5.000000e-01 : f32
    %209 = vector.broadcast %cst_63 : f32 to vector<8x32xf32>
    %210 = arith.mulf %209, %208 : vector<8x32xf32>
    %cst_64 = arith.constant 5.000000e-01 : f32
    %211 = vector.broadcast %cst_64 : f32 to vector<8x32xf32>
    %212 = arith.addf %210, %211 : vector<8x32xf32>
    %213 = arith.mulf %206, %189 : vector<8x32xf32>
    %214 = arith.mulf %201, %207 : vector<8x32xf32>
    %215 = arith.addf %213, %214 : vector<8x32xf32>
    %216 = math.tanh %215 : vector<8x32xf32>
    %217 = arith.mulf %212, %216 : vector<8x32xf32>
    %218 = tpu.concatenate %35, %61, %87, %113, %139, %165, %191, %217 in 0 : vector<8x32xf32>, vector<8x32xf32>, vector<8x32xf32>, vector<8x32xf32>, vector<8x32xf32>, vector<8x32xf32>, vector<8x32xf32>, vector<8x32xf32> -> vector<64x32xf32>
    %219 = arith.truncf %218 : vector<64x32xf32> to vector<64x32xbf16>
    %c0_65 = arith.constant 0 : index
    %c0_66 = arith.constant 0 : index
    %220 = vector.load %arg5[%c0_65, %c0_66] : memref<32x128xbf16, #tpu.memory_space<vmem>>, vector<32x128xbf16>
    %cst_67 = arith.constant dense<0.000000e+00> : vector<64x128xf32>
    %221 = tpu.matmul %219, %220, %cst_67 {dimension_numbers = #tpu.dot_dimension_numbers<[1], [0], [0], [1], [0, 0, 1, 1], [], []>} : vector<64x32xbf16>, vector<32x128xbf16>, vector<64x128xf32> -> vector<64x128xf32>
    %c0_68 = arith.constant 0 : index
    %c0_69 = arith.constant 0 : index
    %222 = vector.load %arg7[%c0_68, %c0_69] : memref<1x128xf32, #tpu.memory_space<vmem>>, vector<1x128xf32>
    %223 = vector.broadcast %222 : vector<1x128xf32> to vector<64x128xf32>
    %224 = arith.addf %221, %223 : vector<64x128xf32>
    %c0_70 = arith.constant 0 : index
    %c0_71 = arith.constant 0 : index
    %225 = vector.load %arg6[%c0_70, %c0_71] : memref<32x128xbf16, #tpu.memory_space<vmem>>, vector<32x128xbf16>
    %cst_72 = arith.constant 0.000000e+00 : f32
    %226 = vector.broadcast %cst_72 : f32 to vector<8x32xf32>
    %cst_73 = arith.constant 0.000000e+00 : f32
    %227 = vector.broadcast %cst_73 : f32 to vector<8x32xf32>
    %228 = vector.extract_strided_slice %224 {offsets = [0, 0], sizes = [8, 128], strides = [1, 1]} : vector<64x128xf32> to vector<8x128xf32>
    %229 = arith.truncf %226 : vector<8x32xf32> to vector<8x32xbf16>
    %cst_74 = arith.constant dense<0.000000e+00> : vector<8x128xf32>
    %230 = tpu.matmul %229, %225, %cst_74 {dimension_numbers = #tpu.dot_dimension_numbers<[1], [0], [0], [1], [0, 0, 1, 1], [], []>} : vector<8x32xbf16>, vector<32x128xbf16>, vector<8x128xf32> -> vector<8x128xf32>
    %231 = arith.addf %228, %230 : vector<8x128xf32>
    %232 = math.tanh %231 : vector<8x128xf32>
    %233 = vector.extract_strided_slice %232 {offsets = [0, 0], sizes = [8, 32], strides = [1, 1]} : vector<8x128xf32> to vector<8x32xf32>
    %cst_75 = arith.constant 5.000000e-01 : f32
    %234 = vector.broadcast %cst_75 : f32 to vector<8x32xf32>
    %235 = arith.mulf %234, %233 : vector<8x32xf32>
    %cst_76 = arith.constant 5.000000e-01 : f32
    %236 = vector.broadcast %cst_76 : f32 to vector<8x32xf32>
    %237 = arith.addf %235, %236 : vector<8x32xf32>
    %238 = vector.extract_strided_slice %232 {offsets = [0, 32], sizes = [8, 32], strides = [1, 1]} : vector<8x128xf32> to vector<8x32xf32>
    %cst_77 = arith.constant 5.000000e-01 : f32
    %239 = vector.broadcast %cst_77 : f32 to vector<8x32xf32>
    %240 = arith.mulf %239, %238 : vector<8x32xf32>
    %cst_78 = arith.constant 5.000000e-01 : f32
    %241 = vector.broadcast %cst_78 : f32 to vector<8x32xf32>
    %242 = arith.addf %240, %241 : vector<8x32xf32>
    %243 = vector.extract_strided_slice %232 {offsets = [0, 64], sizes = [8, 32], strides = [1, 1]} : vector<8x128xf32> to vector<8x32xf32>
    %244 = vector.extract_strided_slice %232 {offsets = [0, 96], sizes = [8, 32], strides = [1, 1]} : vector<8x128xf32> to vector<8x32xf32>
    %cst_79 = arith.constant 5.000000e-01 : f32
    %245 = vector.broadcast %cst_79 : f32 to vector<8x32xf32>
    %246 = arith.mulf %245, %244 : vector<8x32xf32>
    %cst_80 = arith.constant 5.000000e-01 : f32
    %247 = vector.broadcast %cst_80 : f32 to vector<8x32xf32>
    %248 = arith.addf %246, %247 : vector<8x32xf32>
    %249 = arith.mulf %242, %227 : vector<8x32xf32>
    %250 = arith.mulf %237, %243 : vector<8x32xf32>
    %251 = arith.addf %249, %250 : vector<8x32xf32>
    %252 = math.tanh %251 : vector<8x32xf32>
    %253 = arith.mulf %248, %252 : vector<8x32xf32>
    %254 = vector.extract_strided_slice %224 {offsets = [8, 0], sizes = [8, 128], strides = [1, 1]} : vector<64x128xf32> to vector<8x128xf32>
    %255 = arith.truncf %253 : vector<8x32xf32> to vector<8x32xbf16>
    %cst_81 = arith.constant dense<0.000000e+00> : vector<8x128xf32>
    %256 = tpu.matmul %255, %225, %cst_81 {dimension_numbers = #tpu.dot_dimension_numbers<[1], [0], [0], [1], [0, 0, 1, 1], [], []>} : vector<8x32xbf16>, vector<32x128xbf16>, vector<8x128xf32> -> vector<8x128xf32>
    %257 = arith.addf %254, %256 : vector<8x128xf32>
    %258 = math.tanh %257 : vector<8x128xf32>
    %259 = vector.extract_strided_slice %258 {offsets = [0, 0], sizes = [8, 32], strides = [1, 1]} : vector<8x128xf32> to vector<8x32xf32>
    %cst_82 = arith.constant 5.000000e-01 : f32
    %260 = vector.broadcast %cst_82 : f32 to vector<8x32xf32>
    %261 = arith.mulf %260, %259 : vector<8x32xf32>
    %cst_83 = arith.constant 5.000000e-01 : f32
    %262 = vector.broadcast %cst_83 : f32 to vector<8x32xf32>
    %263 = arith.addf %261, %262 : vector<8x32xf32>
    %264 = vector.extract_strided_slice %258 {offsets = [0, 32], sizes = [8, 32], strides = [1, 1]} : vector<8x128xf32> to vector<8x32xf32>
    %cst_84 = arith.constant 5.000000e-01 : f32
    %265 = vector.broadcast %cst_84 : f32 to vector<8x32xf32>
    %266 = arith.mulf %265, %264 : vector<8x32xf32>
    %cst_85 = arith.constant 5.000000e-01 : f32
    %267 = vector.broadcast %cst_85 : f32 to vector<8x32xf32>
    %268 = arith.addf %266, %267 : vector<8x32xf32>
    %269 = vector.extract_strided_slice %258 {offsets = [0, 64], sizes = [8, 32], strides = [1, 1]} : vector<8x128xf32> to vector<8x32xf32>
    %270 = vector.extract_strided_slice %258 {offsets = [0, 96], sizes = [8, 32], strides = [1, 1]} : vector<8x128xf32> to vector<8x32xf32>
    %cst_86 = arith.constant 5.000000e-01 : f32
    %271 = vector.broadcast %cst_86 : f32 to vector<8x32xf32>
    %272 = arith.mulf %271, %270 : vector<8x32xf32>
    %cst_87 = arith.constant 5.000000e-01 : f32
    %273 = vector.broadcast %cst_87 : f32 to vector<8x32xf32>
    %274 = arith.addf %272, %273 : vector<8x32xf32>
    %275 = arith.mulf %268, %251 : vector<8x32xf32>
    %276 = arith.mulf %263, %269 : vector<8x32xf32>
    %277 = arith.addf %275, %276 : vector<8x32xf32>
    %278 = math.tanh %277 : vector<8x32xf32>
    %279 = arith.mulf %274, %278 : vector<8x32xf32>
    %280 = vector.extract_strided_slice %224 {offsets = [16, 0], sizes = [8, 128], strides = [1, 1]} : vector<64x128xf32> to vector<8x128xf32>
    %281 = arith.truncf %279 : vector<8x32xf32> to vector<8x32xbf16>
    %cst_88 = arith.constant dense<0.000000e+00> : vector<8x128xf32>
    %282 = tpu.matmul %281, %225, %cst_88 {dimension_numbers = #tpu.dot_dimension_numbers<[1], [0], [0], [1], [0, 0, 1, 1], [], []>} : vector<8x32xbf16>, vector<32x128xbf16>, vector<8x128xf32> -> vector<8x128xf32>
    %283 = arith.addf %280, %282 : vector<8x128xf32>
    %284 = math.tanh %283 : vector<8x128xf32>
    %285 = vector.extract_strided_slice %284 {offsets = [0, 0], sizes = [8, 32], strides = [1, 1]} : vector<8x128xf32> to vector<8x32xf32>
    %cst_89 = arith.constant 5.000000e-01 : f32
    %286 = vector.broadcast %cst_89 : f32 to vector<8x32xf32>
    %287 = arith.mulf %286, %285 : vector<8x32xf32>
    %cst_90 = arith.constant 5.000000e-01 : f32
    %288 = vector.broadcast %cst_90 : f32 to vector<8x32xf32>
    %289 = arith.addf %287, %288 : vector<8x32xf32>
    %290 = vector.extract_strided_slice %284 {offsets = [0, 32], sizes = [8, 32], strides = [1, 1]} : vector<8x128xf32> to vector<8x32xf32>
    %cst_91 = arith.constant 5.000000e-01 : f32
    %291 = vector.broadcast %cst_91 : f32 to vector<8x32xf32>
    %292 = arith.mulf %291, %290 : vector<8x32xf32>
    %cst_92 = arith.constant 5.000000e-01 : f32
    %293 = vector.broadcast %cst_92 : f32 to vector<8x32xf32>
    %294 = arith.addf %292, %293 : vector<8x32xf32>
    %295 = vector.extract_strided_slice %284 {offsets = [0, 64], sizes = [8, 32], strides = [1, 1]} : vector<8x128xf32> to vector<8x32xf32>
    %296 = vector.extract_strided_slice %284 {offsets = [0, 96], sizes = [8, 32], strides = [1, 1]} : vector<8x128xf32> to vector<8x32xf32>
    %cst_93 = arith.constant 5.000000e-01 : f32
    %297 = vector.broadcast %cst_93 : f32 to vector<8x32xf32>
    %298 = arith.mulf %297, %296 : vector<8x32xf32>
    %cst_94 = arith.constant 5.000000e-01 : f32
    %299 = vector.broadcast %cst_94 : f32 to vector<8x32xf32>
    %300 = arith.addf %298, %299 : vector<8x32xf32>
    %301 = arith.mulf %294, %277 : vector<8x32xf32>
    %302 = arith.mulf %289, %295 : vector<8x32xf32>
    %303 = arith.addf %301, %302 : vector<8x32xf32>
    %304 = math.tanh %303 : vector<8x32xf32>
    %305 = arith.mulf %300, %304 : vector<8x32xf32>
    %306 = vector.extract_strided_slice %224 {offsets = [24, 0], sizes = [8, 128], strides = [1, 1]} : vector<64x128xf32> to vector<8x128xf32>
    %307 = arith.truncf %305 : vector<8x32xf32> to vector<8x32xbf16>
    %cst_95 = arith.constant dense<0.000000e+00> : vector<8x128xf32>
    %308 = tpu.matmul %307, %225, %cst_95 {dimension_numbers = #tpu.dot_dimension_numbers<[1], [0], [0], [1], [0, 0, 1, 1], [], []>} : vector<8x32xbf16>, vector<32x128xbf16>, vector<8x128xf32> -> vector<8x128xf32>
    %309 = arith.addf %306, %308 : vector<8x128xf32>
    %310 = math.tanh %309 : vector<8x128xf32>
    %311 = vector.extract_strided_slice %310 {offsets = [0, 0], sizes = [8, 32], strides = [1, 1]} : vector<8x128xf32> to vector<8x32xf32>
    %cst_96 = arith.constant 5.000000e-01 : f32
    %312 = vector.broadcast %cst_96 : f32 to vector<8x32xf32>
    %313 = arith.mulf %312, %311 : vector<8x32xf32>
    %cst_97 = arith.constant 5.000000e-01 : f32
    %314 = vector.broadcast %cst_97 : f32 to vector<8x32xf32>
    %315 = arith.addf %313, %314 : vector<8x32xf32>
    %316 = vector.extract_strided_slice %310 {offsets = [0, 32], sizes = [8, 32], strides = [1, 1]} : vector<8x128xf32> to vector<8x32xf32>
    %cst_98 = arith.constant 5.000000e-01 : f32
    %317 = vector.broadcast %cst_98 : f32 to vector<8x32xf32>
    %318 = arith.mulf %317, %316 : vector<8x32xf32>
    %cst_99 = arith.constant 5.000000e-01 : f32
    %319 = vector.broadcast %cst_99 : f32 to vector<8x32xf32>
    %320 = arith.addf %318, %319 : vector<8x32xf32>
    %321 = vector.extract_strided_slice %310 {offsets = [0, 64], sizes = [8, 32], strides = [1, 1]} : vector<8x128xf32> to vector<8x32xf32>
    %322 = vector.extract_strided_slice %310 {offsets = [0, 96], sizes = [8, 32], strides = [1, 1]} : vector<8x128xf32> to vector<8x32xf32>
    %cst_100 = arith.constant 5.000000e-01 : f32
    %323 = vector.broadcast %cst_100 : f32 to vector<8x32xf32>
    %324 = arith.mulf %323, %322 : vector<8x32xf32>
    %cst_101 = arith.constant 5.000000e-01 : f32
    %325 = vector.broadcast %cst_101 : f32 to vector<8x32xf32>
    %326 = arith.addf %324, %325 : vector<8x32xf32>
    %327 = arith.mulf %320, %303 : vector<8x32xf32>
    %328 = arith.mulf %315, %321 : vector<8x32xf32>
    %329 = arith.addf %327, %328 : vector<8x32xf32>
    %330 = math.tanh %329 : vector<8x32xf32>
    %331 = arith.mulf %326, %330 : vector<8x32xf32>
    %332 = vector.extract_strided_slice %224 {offsets = [32, 0], sizes = [8, 128], strides = [1, 1]} : vector<64x128xf32> to vector<8x128xf32>
    %333 = arith.truncf %331 : vector<8x32xf32> to vector<8x32xbf16>
    %cst_102 = arith.constant dense<0.000000e+00> : vector<8x128xf32>
    %334 = tpu.matmul %333, %225, %cst_102 {dimension_numbers = #tpu.dot_dimension_numbers<[1], [0], [0], [1], [0, 0, 1, 1], [], []>} : vector<8x32xbf16>, vector<32x128xbf16>, vector<8x128xf32> -> vector<8x128xf32>
    %335 = arith.addf %332, %334 : vector<8x128xf32>
    %336 = math.tanh %335 : vector<8x128xf32>
    %337 = vector.extract_strided_slice %336 {offsets = [0, 0], sizes = [8, 32], strides = [1, 1]} : vector<8x128xf32> to vector<8x32xf32>
    %cst_103 = arith.constant 5.000000e-01 : f32
    %338 = vector.broadcast %cst_103 : f32 to vector<8x32xf32>
    %339 = arith.mulf %338, %337 : vector<8x32xf32>
    %cst_104 = arith.constant 5.000000e-01 : f32
    %340 = vector.broadcast %cst_104 : f32 to vector<8x32xf32>
    %341 = arith.addf %339, %340 : vector<8x32xf32>
    %342 = vector.extract_strided_slice %336 {offsets = [0, 32], sizes = [8, 32], strides = [1, 1]} : vector<8x128xf32> to vector<8x32xf32>
    %cst_105 = arith.constant 5.000000e-01 : f32
    %343 = vector.broadcast %cst_105 : f32 to vector<8x32xf32>
    %344 = arith.mulf %343, %342 : vector<8x32xf32>
    %cst_106 = arith.constant 5.000000e-01 : f32
    %345 = vector.broadcast %cst_106 : f32 to vector<8x32xf32>
    %346 = arith.addf %344, %345 : vector<8x32xf32>
    %347 = vector.extract_strided_slice %336 {offsets = [0, 64], sizes = [8, 32], strides = [1, 1]} : vector<8x128xf32> to vector<8x32xf32>
    %348 = vector.extract_strided_slice %336 {offsets = [0, 96], sizes = [8, 32], strides = [1, 1]} : vector<8x128xf32> to vector<8x32xf32>
    %cst_107 = arith.constant 5.000000e-01 : f32
    %349 = vector.broadcast %cst_107 : f32 to vector<8x32xf32>
    %350 = arith.mulf %349, %348 : vector<8x32xf32>
    %cst_108 = arith.constant 5.000000e-01 : f32
    %351 = vector.broadcast %cst_108 : f32 to vector<8x32xf32>
    %352 = arith.addf %350, %351 : vector<8x32xf32>
    %353 = arith.mulf %346, %329 : vector<8x32xf32>
    %354 = arith.mulf %341, %347 : vector<8x32xf32>
    %355 = arith.addf %353, %354 : vector<8x32xf32>
    %356 = math.tanh %355 : vector<8x32xf32>
    %357 = arith.mulf %352, %356 : vector<8x32xf32>
    %358 = vector.extract_strided_slice %224 {offsets = [40, 0], sizes = [8, 128], strides = [1, 1]} : vector<64x128xf32> to vector<8x128xf32>
    %359 = arith.truncf %357 : vector<8x32xf32> to vector<8x32xbf16>
    %cst_109 = arith.constant dense<0.000000e+00> : vector<8x128xf32>
    %360 = tpu.matmul %359, %225, %cst_109 {dimension_numbers = #tpu.dot_dimension_numbers<[1], [0], [0], [1], [0, 0, 1, 1], [], []>} : vector<8x32xbf16>, vector<32x128xbf16>, vector<8x128xf32> -> vector<8x128xf32>
    %361 = arith.addf %358, %360 : vector<8x128xf32>
    %362 = math.tanh %361 : vector<8x128xf32>
    %363 = vector.extract_strided_slice %362 {offsets = [0, 0], sizes = [8, 32], strides = [1, 1]} : vector<8x128xf32> to vector<8x32xf32>
    %cst_110 = arith.constant 5.000000e-01 : f32
    %364 = vector.broadcast %cst_110 : f32 to vector<8x32xf32>
    %365 = arith.mulf %364, %363 : vector<8x32xf32>
    %cst_111 = arith.constant 5.000000e-01 : f32
    %366 = vector.broadcast %cst_111 : f32 to vector<8x32xf32>
    %367 = arith.addf %365, %366 : vector<8x32xf32>
    %368 = vector.extract_strided_slice %362 {offsets = [0, 32], sizes = [8, 32], strides = [1, 1]} : vector<8x128xf32> to vector<8x32xf32>
    %cst_112 = arith.constant 5.000000e-01 : f32
    %369 = vector.broadcast %cst_112 : f32 to vector<8x32xf32>
    %370 = arith.mulf %369, %368 : vector<8x32xf32>
    %cst_113 = arith.constant 5.000000e-01 : f32
    %371 = vector.broadcast %cst_113 : f32 to vector<8x32xf32>
    %372 = arith.addf %370, %371 : vector<8x32xf32>
    %373 = vector.extract_strided_slice %362 {offsets = [0, 64], sizes = [8, 32], strides = [1, 1]} : vector<8x128xf32> to vector<8x32xf32>
    %374 = vector.extract_strided_slice %362 {offsets = [0, 96], sizes = [8, 32], strides = [1, 1]} : vector<8x128xf32> to vector<8x32xf32>
    %cst_114 = arith.constant 5.000000e-01 : f32
    %375 = vector.broadcast %cst_114 : f32 to vector<8x32xf32>
    %376 = arith.mulf %375, %374 : vector<8x32xf32>
    %cst_115 = arith.constant 5.000000e-01 : f32
    %377 = vector.broadcast %cst_115 : f32 to vector<8x32xf32>
    %378 = arith.addf %376, %377 : vector<8x32xf32>
    %379 = arith.mulf %372, %355 : vector<8x32xf32>
    %380 = arith.mulf %367, %373 : vector<8x32xf32>
    %381 = arith.addf %379, %380 : vector<8x32xf32>
    %382 = math.tanh %381 : vector<8x32xf32>
    %383 = arith.mulf %378, %382 : vector<8x32xf32>
    %384 = vector.extract_strided_slice %224 {offsets = [48, 0], sizes = [8, 128], strides = [1, 1]} : vector<64x128xf32> to vector<8x128xf32>
    %385 = arith.truncf %383 : vector<8x32xf32> to vector<8x32xbf16>
    %cst_116 = arith.constant dense<0.000000e+00> : vector<8x128xf32>
    %386 = tpu.matmul %385, %225, %cst_116 {dimension_numbers = #tpu.dot_dimension_numbers<[1], [0], [0], [1], [0, 0, 1, 1], [], []>} : vector<8x32xbf16>, vector<32x128xbf16>, vector<8x128xf32> -> vector<8x128xf32>
    %387 = arith.addf %384, %386 : vector<8x128xf32>
    %388 = math.tanh %387 : vector<8x128xf32>
    %389 = vector.extract_strided_slice %388 {offsets = [0, 0], sizes = [8, 32], strides = [1, 1]} : vector<8x128xf32> to vector<8x32xf32>
    %cst_117 = arith.constant 5.000000e-01 : f32
    %390 = vector.broadcast %cst_117 : f32 to vector<8x32xf32>
    %391 = arith.mulf %390, %389 : vector<8x32xf32>
    %cst_118 = arith.constant 5.000000e-01 : f32
    %392 = vector.broadcast %cst_118 : f32 to vector<8x32xf32>
    %393 = arith.addf %391, %392 : vector<8x32xf32>
    %394 = vector.extract_strided_slice %388 {offsets = [0, 32], sizes = [8, 32], strides = [1, 1]} : vector<8x128xf32> to vector<8x32xf32>
    %cst_119 = arith.constant 5.000000e-01 : f32
    %395 = vector.broadcast %cst_119 : f32 to vector<8x32xf32>
    %396 = arith.mulf %395, %394 : vector<8x32xf32>
    %cst_120 = arith.constant 5.000000e-01 : f32
    %397 = vector.broadcast %cst_120 : f32 to vector<8x32xf32>
    %398 = arith.addf %396, %397 : vector<8x32xf32>
    %399 = vector.extract_strided_slice %388 {offsets = [0, 64], sizes = [8, 32], strides = [1, 1]} : vector<8x128xf32> to vector<8x32xf32>
    %400 = vector.extract_strided_slice %388 {offsets = [0, 96], sizes = [8, 32], strides = [1, 1]} : vector<8x128xf32> to vector<8x32xf32>
    %cst_121 = arith.constant 5.000000e-01 : f32
    %401 = vector.broadcast %cst_121 : f32 to vector<8x32xf32>
    %402 = arith.mulf %401, %400 : vector<8x32xf32>
    %cst_122 = arith.constant 5.000000e-01 : f32
    %403 = vector.broadcast %cst_122 : f32 to vector<8x32xf32>
    %404 = arith.addf %402, %403 : vector<8x32xf32>
    %405 = arith.mulf %398, %381 : vector<8x32xf32>
    %406 = arith.mulf %393, %399 : vector<8x32xf32>
    %407 = arith.addf %405, %406 : vector<8x32xf32>
    %408 = math.tanh %407 : vector<8x32xf32>
    %409 = arith.mulf %404, %408 : vector<8x32xf32>
    %410 = vector.extract_strided_slice %224 {offsets = [56, 0], sizes = [8, 128], strides = [1, 1]} : vector<64x128xf32> to vector<8x128xf32>
    %411 = arith.truncf %409 : vector<8x32xf32> to vector<8x32xbf16>
    %cst_123 = arith.constant dense<0.000000e+00> : vector<8x128xf32>
    %412 = tpu.matmul %411, %225, %cst_123 {dimension_numbers = #tpu.dot_dimension_numbers<[1], [0], [0], [1], [0, 0, 1, 1], [], []>} : vector<8x32xbf16>, vector<32x128xbf16>, vector<8x128xf32> -> vector<8x128xf32>
    %413 = arith.addf %410, %412 : vector<8x128xf32>
    %414 = math.tanh %413 : vector<8x128xf32>
    %415 = vector.extract_strided_slice %414 {offsets = [0, 0], sizes = [8, 32], strides = [1, 1]} : vector<8x128xf32> to vector<8x32xf32>
    %cst_124 = arith.constant 5.000000e-01 : f32
    %416 = vector.broadcast %cst_124 : f32 to vector<8x32xf32>
    %417 = arith.mulf %416, %415 : vector<8x32xf32>
    %cst_125 = arith.constant 5.000000e-01 : f32
    %418 = vector.broadcast %cst_125 : f32 to vector<8x32xf32>
    %419 = arith.addf %417, %418 : vector<8x32xf32>
    %420 = vector.extract_strided_slice %414 {offsets = [0, 32], sizes = [8, 32], strides = [1, 1]} : vector<8x128xf32> to vector<8x32xf32>
    %cst_126 = arith.constant 5.000000e-01 : f32
    %421 = vector.broadcast %cst_126 : f32 to vector<8x32xf32>
    %422 = arith.mulf %421, %420 : vector<8x32xf32>
    %cst_127 = arith.constant 5.000000e-01 : f32
    %423 = vector.broadcast %cst_127 : f32 to vector<8x32xf32>
    %424 = arith.addf %422, %423 : vector<8x32xf32>
    %425 = vector.extract_strided_slice %414 {offsets = [0, 64], sizes = [8, 32], strides = [1, 1]} : vector<8x128xf32> to vector<8x32xf32>
    %426 = vector.extract_strided_slice %414 {offsets = [0, 96], sizes = [8, 32], strides = [1, 1]} : vector<8x128xf32> to vector<8x32xf32>
    %cst_128 = arith.constant 5.000000e-01 : f32
    %427 = vector.broadcast %cst_128 : f32 to vector<8x32xf32>
    %428 = arith.mulf %427, %426 : vector<8x32xf32>
    %cst_129 = arith.constant 5.000000e-01 : f32
    %429 = vector.broadcast %cst_129 : f32 to vector<8x32xf32>
    %430 = arith.addf %428, %429 : vector<8x32xf32>
    %431 = arith.mulf %424, %407 : vector<8x32xf32>
    %432 = arith.mulf %419, %425 : vector<8x32xf32>
    %433 = arith.addf %431, %432 : vector<8x32xf32>
    %434 = math.tanh %433 : vector<8x32xf32>
    %435 = arith.mulf %430, %434 : vector<8x32xf32>
    %436 = tpu.concatenate %253, %279, %305, %331, %357, %383, %409, %435 in 0 : vector<8x32xf32>, vector<8x32xf32>, vector<8x32xf32>, vector<8x32xf32>, vector<8x32xf32>, vector<8x32xf32>, vector<8x32xf32>, vector<8x32xf32> -> vector<64x32xf32>
    %437 = arith.truncf %436 : vector<64x32xf32> to vector<64x32xbf16>
    %c0_130 = arith.constant 0 : index
    %c0_131 = arith.constant 0 : index
    %438 = vector.load %arg8[%c0_130, %c0_131] : memref<32x128xbf16, #tpu.memory_space<vmem>>, vector<32x128xbf16>
    %cst_132 = arith.constant dense<0.000000e+00> : vector<64x128xf32>
    %439 = tpu.matmul %437, %438, %cst_132 {dimension_numbers = #tpu.dot_dimension_numbers<[1], [0], [0], [1], [0, 0, 1, 1], [], []>} : vector<64x32xbf16>, vector<32x128xbf16>, vector<64x128xf32> -> vector<64x128xf32>
    %c0_133 = arith.constant 0 : index
    %c0_134 = arith.constant 0 : index
    %440 = vector.load %arg10[%c0_133, %c0_134] : memref<1x128xf32, #tpu.memory_space<vmem>>, vector<1x128xf32>
    %441 = vector.broadcast %440 : vector<1x128xf32> to vector<64x128xf32>
    %442 = arith.addf %439, %441 : vector<64x128xf32>
    %c0_135 = arith.constant 0 : index
    %c0_136 = arith.constant 0 : index
    %443 = vector.load %arg9[%c0_135, %c0_136] : memref<32x128xbf16, #tpu.memory_space<vmem>>, vector<32x128xbf16>
    %cst_137 = arith.constant 0.000000e+00 : f32
    %444 = vector.broadcast %cst_137 : f32 to vector<8x32xf32>
    %cst_138 = arith.constant 0.000000e+00 : f32
    %445 = vector.broadcast %cst_138 : f32 to vector<8x32xf32>
    %446 = vector.extract_strided_slice %442 {offsets = [0, 0], sizes = [8, 128], strides = [1, 1]} : vector<64x128xf32> to vector<8x128xf32>
    %447 = arith.truncf %444 : vector<8x32xf32> to vector<8x32xbf16>
    %cst_139 = arith.constant dense<0.000000e+00> : vector<8x128xf32>
    %448 = tpu.matmul %447, %443, %cst_139 {dimension_numbers = #tpu.dot_dimension_numbers<[1], [0], [0], [1], [0, 0, 1, 1], [], []>} : vector<8x32xbf16>, vector<32x128xbf16>, vector<8x128xf32> -> vector<8x128xf32>
    %449 = arith.addf %446, %448 : vector<8x128xf32>
    %450 = math.tanh %449 : vector<8x128xf32>
    %451 = vector.extract_strided_slice %450 {offsets = [0, 0], sizes = [8, 32], strides = [1, 1]} : vector<8x128xf32> to vector<8x32xf32>
    %cst_140 = arith.constant 5.000000e-01 : f32
    %452 = vector.broadcast %cst_140 : f32 to vector<8x32xf32>
    %453 = arith.mulf %452, %451 : vector<8x32xf32>
    %cst_141 = arith.constant 5.000000e-01 : f32
    %454 = vector.broadcast %cst_141 : f32 to vector<8x32xf32>
    %455 = arith.addf %453, %454 : vector<8x32xf32>
    %456 = vector.extract_strided_slice %450 {offsets = [0, 32], sizes = [8, 32], strides = [1, 1]} : vector<8x128xf32> to vector<8x32xf32>
    %cst_142 = arith.constant 5.000000e-01 : f32
    %457 = vector.broadcast %cst_142 : f32 to vector<8x32xf32>
    %458 = arith.mulf %457, %456 : vector<8x32xf32>
    %cst_143 = arith.constant 5.000000e-01 : f32
    %459 = vector.broadcast %cst_143 : f32 to vector<8x32xf32>
    %460 = arith.addf %458, %459 : vector<8x32xf32>
    %461 = vector.extract_strided_slice %450 {offsets = [0, 64], sizes = [8, 32], strides = [1, 1]} : vector<8x128xf32> to vector<8x32xf32>
    %462 = vector.extract_strided_slice %450 {offsets = [0, 96], sizes = [8, 32], strides = [1, 1]} : vector<8x128xf32> to vector<8x32xf32>
    %cst_144 = arith.constant 5.000000e-01 : f32
    %463 = vector.broadcast %cst_144 : f32 to vector<8x32xf32>
    %464 = arith.mulf %463, %462 : vector<8x32xf32>
    %cst_145 = arith.constant 5.000000e-01 : f32
    %465 = vector.broadcast %cst_145 : f32 to vector<8x32xf32>
    %466 = arith.addf %464, %465 : vector<8x32xf32>
    %467 = arith.mulf %460, %445 : vector<8x32xf32>
    %468 = arith.mulf %455, %461 : vector<8x32xf32>
    %469 = arith.addf %467, %468 : vector<8x32xf32>
    %470 = math.tanh %469 : vector<8x32xf32>
    %471 = arith.mulf %466, %470 : vector<8x32xf32>
    %472 = vector.extract_strided_slice %442 {offsets = [8, 0], sizes = [8, 128], strides = [1, 1]} : vector<64x128xf32> to vector<8x128xf32>
    %473 = arith.truncf %471 : vector<8x32xf32> to vector<8x32xbf16>
    %cst_146 = arith.constant dense<0.000000e+00> : vector<8x128xf32>
    %474 = tpu.matmul %473, %443, %cst_146 {dimension_numbers = #tpu.dot_dimension_numbers<[1], [0], [0], [1], [0, 0, 1, 1], [], []>} : vector<8x32xbf16>, vector<32x128xbf16>, vector<8x128xf32> -> vector<8x128xf32>
    %475 = arith.addf %472, %474 : vector<8x128xf32>
    %476 = math.tanh %475 : vector<8x128xf32>
    %477 = vector.extract_strided_slice %476 {offsets = [0, 0], sizes = [8, 32], strides = [1, 1]} : vector<8x128xf32> to vector<8x32xf32>
    %cst_147 = arith.constant 5.000000e-01 : f32
    %478 = vector.broadcast %cst_147 : f32 to vector<8x32xf32>
    %479 = arith.mulf %478, %477 : vector<8x32xf32>
    %cst_148 = arith.constant 5.000000e-01 : f32
    %480 = vector.broadcast %cst_148 : f32 to vector<8x32xf32>
    %481 = arith.addf %479, %480 : vector<8x32xf32>
    %482 = vector.extract_strided_slice %476 {offsets = [0, 32], sizes = [8, 32], strides = [1, 1]} : vector<8x128xf32> to vector<8x32xf32>
    %cst_149 = arith.constant 5.000000e-01 : f32
    %483 = vector.broadcast %cst_149 : f32 to vector<8x32xf32>
    %484 = arith.mulf %483, %482 : vector<8x32xf32>
    %cst_150 = arith.constant 5.000000e-01 : f32
    %485 = vector.broadcast %cst_150 : f32 to vector<8x32xf32>
    %486 = arith.addf %484, %485 : vector<8x32xf32>
    %487 = vector.extract_strided_slice %476 {offsets = [0, 64], sizes = [8, 32], strides = [1, 1]} : vector<8x128xf32> to vector<8x32xf32>
    %488 = vector.extract_strided_slice %476 {offsets = [0, 96], sizes = [8, 32], strides = [1, 1]} : vector<8x128xf32> to vector<8x32xf32>
    %cst_151 = arith.constant 5.000000e-01 : f32
    %489 = vector.broadcast %cst_151 : f32 to vector<8x32xf32>
    %490 = arith.mulf %489, %488 : vector<8x32xf32>
    %cst_152 = arith.constant 5.000000e-01 : f32
    %491 = vector.broadcast %cst_152 : f32 to vector<8x32xf32>
    %492 = arith.addf %490, %491 : vector<8x32xf32>
    %493 = arith.mulf %486, %469 : vector<8x32xf32>
    %494 = arith.mulf %481, %487 : vector<8x32xf32>
    %495 = arith.addf %493, %494 : vector<8x32xf32>
    %496 = math.tanh %495 : vector<8x32xf32>
    %497 = arith.mulf %492, %496 : vector<8x32xf32>
    %498 = vector.extract_strided_slice %442 {offsets = [16, 0], sizes = [8, 128], strides = [1, 1]} : vector<64x128xf32> to vector<8x128xf32>
    %499 = arith.truncf %497 : vector<8x32xf32> to vector<8x32xbf16>
    %cst_153 = arith.constant dense<0.000000e+00> : vector<8x128xf32>
    %500 = tpu.matmul %499, %443, %cst_153 {dimension_numbers = #tpu.dot_dimension_numbers<[1], [0], [0], [1], [0, 0, 1, 1], [], []>} : vector<8x32xbf16>, vector<32x128xbf16>, vector<8x128xf32> -> vector<8x128xf32>
    %501 = arith.addf %498, %500 : vector<8x128xf32>
    %502 = math.tanh %501 : vector<8x128xf32>
    %503 = vector.extract_strided_slice %502 {offsets = [0, 0], sizes = [8, 32], strides = [1, 1]} : vector<8x128xf32> to vector<8x32xf32>
    %cst_154 = arith.constant 5.000000e-01 : f32
    %504 = vector.broadcast %cst_154 : f32 to vector<8x32xf32>
    %505 = arith.mulf %504, %503 : vector<8x32xf32>
    %cst_155 = arith.constant 5.000000e-01 : f32
    %506 = vector.broadcast %cst_155 : f32 to vector<8x32xf32>
    %507 = arith.addf %505, %506 : vector<8x32xf32>
    %508 = vector.extract_strided_slice %502 {offsets = [0, 32], sizes = [8, 32], strides = [1, 1]} : vector<8x128xf32> to vector<8x32xf32>
    %cst_156 = arith.constant 5.000000e-01 : f32
    %509 = vector.broadcast %cst_156 : f32 to vector<8x32xf32>
    %510 = arith.mulf %509, %508 : vector<8x32xf32>
    %cst_157 = arith.constant 5.000000e-01 : f32
    %511 = vector.broadcast %cst_157 : f32 to vector<8x32xf32>
    %512 = arith.addf %510, %511 : vector<8x32xf32>
    %513 = vector.extract_strided_slice %502 {offsets = [0, 64], sizes = [8, 32], strides = [1, 1]} : vector<8x128xf32> to vector<8x32xf32>
    %514 = vector.extract_strided_slice %502 {offsets = [0, 96], sizes = [8, 32], strides = [1, 1]} : vector<8x128xf32> to vector<8x32xf32>
    %cst_158 = arith.constant 5.000000e-01 : f32
    %515 = vector.broadcast %cst_158 : f32 to vector<8x32xf32>
    %516 = arith.mulf %515, %514 : vector<8x32xf32>
    %cst_159 = arith.constant 5.000000e-01 : f32
    %517 = vector.broadcast %cst_159 : f32 to vector<8x32xf32>
    %518 = arith.addf %516, %517 : vector<8x32xf32>
    %519 = arith.mulf %512, %495 : vector<8x32xf32>
    %520 = arith.mulf %507, %513 : vector<8x32xf32>
    %521 = arith.addf %519, %520 : vector<8x32xf32>
    %522 = math.tanh %521 : vector<8x32xf32>
    %523 = arith.mulf %518, %522 : vector<8x32xf32>
    %524 = vector.extract_strided_slice %442 {offsets = [24, 0], sizes = [8, 128], strides = [1, 1]} : vector<64x128xf32> to vector<8x128xf32>
    %525 = arith.truncf %523 : vector<8x32xf32> to vector<8x32xbf16>
    %cst_160 = arith.constant dense<0.000000e+00> : vector<8x128xf32>
    %526 = tpu.matmul %525, %443, %cst_160 {dimension_numbers = #tpu.dot_dimension_numbers<[1], [0], [0], [1], [0, 0, 1, 1], [], []>} : vector<8x32xbf16>, vector<32x128xbf16>, vector<8x128xf32> -> vector<8x128xf32>
    %527 = arith.addf %524, %526 : vector<8x128xf32>
    %528 = math.tanh %527 : vector<8x128xf32>
    %529 = vector.extract_strided_slice %528 {offsets = [0, 0], sizes = [8, 32], strides = [1, 1]} : vector<8x128xf32> to vector<8x32xf32>
    %cst_161 = arith.constant 5.000000e-01 : f32
    %530 = vector.broadcast %cst_161 : f32 to vector<8x32xf32>
    %531 = arith.mulf %530, %529 : vector<8x32xf32>
    %cst_162 = arith.constant 5.000000e-01 : f32
    %532 = vector.broadcast %cst_162 : f32 to vector<8x32xf32>
    %533 = arith.addf %531, %532 : vector<8x32xf32>
    %534 = vector.extract_strided_slice %528 {offsets = [0, 32], sizes = [8, 32], strides = [1, 1]} : vector<8x128xf32> to vector<8x32xf32>
    %cst_163 = arith.constant 5.000000e-01 : f32
    %535 = vector.broadcast %cst_163 : f32 to vector<8x32xf32>
    %536 = arith.mulf %535, %534 : vector<8x32xf32>
    %cst_164 = arith.constant 5.000000e-01 : f32
    %537 = vector.broadcast %cst_164 : f32 to vector<8x32xf32>
    %538 = arith.addf %536, %537 : vector<8x32xf32>
    %539 = vector.extract_strided_slice %528 {offsets = [0, 64], sizes = [8, 32], strides = [1, 1]} : vector<8x128xf32> to vector<8x32xf32>
    %540 = vector.extract_strided_slice %528 {offsets = [0, 96], sizes = [8, 32], strides = [1, 1]} : vector<8x128xf32> to vector<8x32xf32>
    %cst_165 = arith.constant 5.000000e-01 : f32
    %541 = vector.broadcast %cst_165 : f32 to vector<8x32xf32>
    %542 = arith.mulf %541, %540 : vector<8x32xf32>
    %cst_166 = arith.constant 5.000000e-01 : f32
    %543 = vector.broadcast %cst_166 : f32 to vector<8x32xf32>
    %544 = arith.addf %542, %543 : vector<8x32xf32>
    %545 = arith.mulf %538, %521 : vector<8x32xf32>
    %546 = arith.mulf %533, %539 : vector<8x32xf32>
    %547 = arith.addf %545, %546 : vector<8x32xf32>
    %548 = math.tanh %547 : vector<8x32xf32>
    %549 = arith.mulf %544, %548 : vector<8x32xf32>
    %550 = vector.extract_strided_slice %442 {offsets = [32, 0], sizes = [8, 128], strides = [1, 1]} : vector<64x128xf32> to vector<8x128xf32>
    %551 = arith.truncf %549 : vector<8x32xf32> to vector<8x32xbf16>
    %cst_167 = arith.constant dense<0.000000e+00> : vector<8x128xf32>
    %552 = tpu.matmul %551, %443, %cst_167 {dimension_numbers = #tpu.dot_dimension_numbers<[1], [0], [0], [1], [0, 0, 1, 1], [], []>} : vector<8x32xbf16>, vector<32x128xbf16>, vector<8x128xf32> -> vector<8x128xf32>
    %553 = arith.addf %550, %552 : vector<8x128xf32>
    %554 = math.tanh %553 : vector<8x128xf32>
    %555 = vector.extract_strided_slice %554 {offsets = [0, 0], sizes = [8, 32], strides = [1, 1]} : vector<8x128xf32> to vector<8x32xf32>
    %cst_168 = arith.constant 5.000000e-01 : f32
    %556 = vector.broadcast %cst_168 : f32 to vector<8x32xf32>
    %557 = arith.mulf %556, %555 : vector<8x32xf32>
    %cst_169 = arith.constant 5.000000e-01 : f32
    %558 = vector.broadcast %cst_169 : f32 to vector<8x32xf32>
    %559 = arith.addf %557, %558 : vector<8x32xf32>
    %560 = vector.extract_strided_slice %554 {offsets = [0, 32], sizes = [8, 32], strides = [1, 1]} : vector<8x128xf32> to vector<8x32xf32>
    %cst_170 = arith.constant 5.000000e-01 : f32
    %561 = vector.broadcast %cst_170 : f32 to vector<8x32xf32>
    %562 = arith.mulf %561, %560 : vector<8x32xf32>
    %cst_171 = arith.constant 5.000000e-01 : f32
    %563 = vector.broadcast %cst_171 : f32 to vector<8x32xf32>
    %564 = arith.addf %562, %563 : vector<8x32xf32>
    %565 = vector.extract_strided_slice %554 {offsets = [0, 64], sizes = [8, 32], strides = [1, 1]} : vector<8x128xf32> to vector<8x32xf32>
    %566 = vector.extract_strided_slice %554 {offsets = [0, 96], sizes = [8, 32], strides = [1, 1]} : vector<8x128xf32> to vector<8x32xf32>
    %cst_172 = arith.constant 5.000000e-01 : f32
    %567 = vector.broadcast %cst_172 : f32 to vector<8x32xf32>
    %568 = arith.mulf %567, %566 : vector<8x32xf32>
    %cst_173 = arith.constant 5.000000e-01 : f32
    %569 = vector.broadcast %cst_173 : f32 to vector<8x32xf32>
    %570 = arith.addf %568, %569 : vector<8x32xf32>
    %571 = arith.mulf %564, %547 : vector<8x32xf32>
    %572 = arith.mulf %559, %565 : vector<8x32xf32>
    %573 = arith.addf %571, %572 : vector<8x32xf32>
    %574 = math.tanh %573 : vector<8x32xf32>
    %575 = arith.mulf %570, %574 : vector<8x32xf32>
    %576 = vector.extract_strided_slice %442 {offsets = [40, 0], sizes = [8, 128], strides = [1, 1]} : vector<64x128xf32> to vector<8x128xf32>
    %577 = arith.truncf %575 : vector<8x32xf32> to vector<8x32xbf16>
    %cst_174 = arith.constant dense<0.000000e+00> : vector<8x128xf32>
    %578 = tpu.matmul %577, %443, %cst_174 {dimension_numbers = #tpu.dot_dimension_numbers<[1], [0], [0], [1], [0, 0, 1, 1], [], []>} : vector<8x32xbf16>, vector<32x128xbf16>, vector<8x128xf32> -> vector<8x128xf32>
    %579 = arith.addf %576, %578 : vector<8x128xf32>
    %580 = math.tanh %579 : vector<8x128xf32>
    %581 = vector.extract_strided_slice %580 {offsets = [0, 0], sizes = [8, 32], strides = [1, 1]} : vector<8x128xf32> to vector<8x32xf32>
    %cst_175 = arith.constant 5.000000e-01 : f32
    %582 = vector.broadcast %cst_175 : f32 to vector<8x32xf32>
    %583 = arith.mulf %582, %581 : vector<8x32xf32>
    %cst_176 = arith.constant 5.000000e-01 : f32
    %584 = vector.broadcast %cst_176 : f32 to vector<8x32xf32>
    %585 = arith.addf %583, %584 : vector<8x32xf32>
    %586 = vector.extract_strided_slice %580 {offsets = [0, 32], sizes = [8, 32], strides = [1, 1]} : vector<8x128xf32> to vector<8x32xf32>
    %cst_177 = arith.constant 5.000000e-01 : f32
    %587 = vector.broadcast %cst_177 : f32 to vector<8x32xf32>
    %588 = arith.mulf %587, %586 : vector<8x32xf32>
    %cst_178 = arith.constant 5.000000e-01 : f32
    %589 = vector.broadcast %cst_178 : f32 to vector<8x32xf32>
    %590 = arith.addf %588, %589 : vector<8x32xf32>
    %591 = vector.extract_strided_slice %580 {offsets = [0, 64], sizes = [8, 32], strides = [1, 1]} : vector<8x128xf32> to vector<8x32xf32>
    %592 = vector.extract_strided_slice %580 {offsets = [0, 96], sizes = [8, 32], strides = [1, 1]} : vector<8x128xf32> to vector<8x32xf32>
    %cst_179 = arith.constant 5.000000e-01 : f32
    %593 = vector.broadcast %cst_179 : f32 to vector<8x32xf32>
    %594 = arith.mulf %593, %592 : vector<8x32xf32>
    %cst_180 = arith.constant 5.000000e-01 : f32
    %595 = vector.broadcast %cst_180 : f32 to vector<8x32xf32>
    %596 = arith.addf %594, %595 : vector<8x32xf32>
    %597 = arith.mulf %590, %573 : vector<8x32xf32>
    %598 = arith.mulf %585, %591 : vector<8x32xf32>
    %599 = arith.addf %597, %598 : vector<8x32xf32>
    %600 = math.tanh %599 : vector<8x32xf32>
    %601 = arith.mulf %596, %600 : vector<8x32xf32>
    %602 = vector.extract_strided_slice %442 {offsets = [48, 0], sizes = [8, 128], strides = [1, 1]} : vector<64x128xf32> to vector<8x128xf32>
    %603 = arith.truncf %601 : vector<8x32xf32> to vector<8x32xbf16>
    %cst_181 = arith.constant dense<0.000000e+00> : vector<8x128xf32>
    %604 = tpu.matmul %603, %443, %cst_181 {dimension_numbers = #tpu.dot_dimension_numbers<[1], [0], [0], [1], [0, 0, 1, 1], [], []>} : vector<8x32xbf16>, vector<32x128xbf16>, vector<8x128xf32> -> vector<8x128xf32>
    %605 = arith.addf %602, %604 : vector<8x128xf32>
    %606 = math.tanh %605 : vector<8x128xf32>
    %607 = vector.extract_strided_slice %606 {offsets = [0, 0], sizes = [8, 32], strides = [1, 1]} : vector<8x128xf32> to vector<8x32xf32>
    %cst_182 = arith.constant 5.000000e-01 : f32
    %608 = vector.broadcast %cst_182 : f32 to vector<8x32xf32>
    %609 = arith.mulf %608, %607 : vector<8x32xf32>
    %cst_183 = arith.constant 5.000000e-01 : f32
    %610 = vector.broadcast %cst_183 : f32 to vector<8x32xf32>
    %611 = arith.addf %609, %610 : vector<8x32xf32>
    %612 = vector.extract_strided_slice %606 {offsets = [0, 32], sizes = [8, 32], strides = [1, 1]} : vector<8x128xf32> to vector<8x32xf32>
    %cst_184 = arith.constant 5.000000e-01 : f32
    %613 = vector.broadcast %cst_184 : f32 to vector<8x32xf32>
    %614 = arith.mulf %613, %612 : vector<8x32xf32>
    %cst_185 = arith.constant 5.000000e-01 : f32
    %615 = vector.broadcast %cst_185 : f32 to vector<8x32xf32>
    %616 = arith.addf %614, %615 : vector<8x32xf32>
    %617 = vector.extract_strided_slice %606 {offsets = [0, 64], sizes = [8, 32], strides = [1, 1]} : vector<8x128xf32> to vector<8x32xf32>
    %618 = vector.extract_strided_slice %606 {offsets = [0, 96], sizes = [8, 32], strides = [1, 1]} : vector<8x128xf32> to vector<8x32xf32>
    %cst_186 = arith.constant 5.000000e-01 : f32
    %619 = vector.broadcast %cst_186 : f32 to vector<8x32xf32>
    %620 = arith.mulf %619, %618 : vector<8x32xf32>
    %cst_187 = arith.constant 5.000000e-01 : f32
    %621 = vector.broadcast %cst_187 : f32 to vector<8x32xf32>
    %622 = arith.addf %620, %621 : vector<8x32xf32>
    %623 = arith.mulf %616, %599 : vector<8x32xf32>
    %624 = arith.mulf %611, %617 : vector<8x32xf32>
    %625 = arith.addf %623, %624 : vector<8x32xf32>
    %626 = math.tanh %625 : vector<8x32xf32>
    %627 = arith.mulf %622, %626 : vector<8x32xf32>
    %628 = vector.extract_strided_slice %442 {offsets = [56, 0], sizes = [8, 128], strides = [1, 1]} : vector<64x128xf32> to vector<8x128xf32>
    %629 = arith.truncf %627 : vector<8x32xf32> to vector<8x32xbf16>
    %cst_188 = arith.constant dense<0.000000e+00> : vector<8x128xf32>
    %630 = tpu.matmul %629, %443, %cst_188 {dimension_numbers = #tpu.dot_dimension_numbers<[1], [0], [0], [1], [0, 0, 1, 1], [], []>} : vector<8x32xbf16>, vector<32x128xbf16>, vector<8x128xf32> -> vector<8x128xf32>
    %631 = arith.addf %628, %630 : vector<8x128xf32>
    %632 = math.tanh %631 : vector<8x128xf32>
    %633 = vector.extract_strided_slice %632 {offsets = [0, 0], sizes = [8, 32], strides = [1, 1]} : vector<8x128xf32> to vector<8x32xf32>
    %cst_189 = arith.constant 5.000000e-01 : f32
    %634 = vector.broadcast %cst_189 : f32 to vector<8x32xf32>
    %635 = arith.mulf %634, %633 : vector<8x32xf32>
    %cst_190 = arith.constant 5.000000e-01 : f32
    %636 = vector.broadcast %cst_190 : f32 to vector<8x32xf32>
    %637 = arith.addf %635, %636 : vector<8x32xf32>
    %638 = vector.extract_strided_slice %632 {offsets = [0, 32], sizes = [8, 32], strides = [1, 1]} : vector<8x128xf32> to vector<8x32xf32>
    %cst_191 = arith.constant 5.000000e-01 : f32
    %639 = vector.broadcast %cst_191 : f32 to vector<8x32xf32>
    %640 = arith.mulf %639, %638 : vector<8x32xf32>
    %cst_192 = arith.constant 5.000000e-01 : f32
    %641 = vector.broadcast %cst_192 : f32 to vector<8x32xf32>
    %642 = arith.addf %640, %641 : vector<8x32xf32>
    %643 = vector.extract_strided_slice %632 {offsets = [0, 64], sizes = [8, 32], strides = [1, 1]} : vector<8x128xf32> to vector<8x32xf32>
    %644 = vector.extract_strided_slice %632 {offsets = [0, 96], sizes = [8, 32], strides = [1, 1]} : vector<8x128xf32> to vector<8x32xf32>
    %cst_193 = arith.constant 5.000000e-01 : f32
    %645 = vector.broadcast %cst_193 : f32 to vector<8x32xf32>
    %646 = arith.mulf %645, %644 : vector<8x32xf32>
    %cst_194 = arith.constant 5.000000e-01 : f32
    %647 = vector.broadcast %cst_194 : f32 to vector<8x32xf32>
    %648 = arith.addf %646, %647 : vector<8x32xf32>
    %649 = arith.mulf %642, %625 : vector<8x32xf32>
    %650 = arith.mulf %637, %643 : vector<8x32xf32>
    %651 = arith.addf %649, %650 : vector<8x32xf32>
    %652 = math.tanh %651 : vector<8x32xf32>
    %653 = arith.mulf %648, %652 : vector<8x32xf32>
    %654 = tpu.concatenate %471, %497, %523, %549, %575, %601, %627, %653 in 0 : vector<8x32xf32>, vector<8x32xf32>, vector<8x32xf32>, vector<8x32xf32>, vector<8x32xf32>, vector<8x32xf32>, vector<8x32xf32>, vector<8x32xf32> -> vector<64x32xf32>
    %655 = arith.truncf %654 : vector<64x32xf32> to vector<64x32xbf16>
    %c0_195 = arith.constant 0 : index
    %c0_196 = arith.constant 0 : index
    %656 = vector.load %arg11[%c0_195, %c0_196] : memref<32x5xbf16, #tpu.memory_space<vmem>>, vector<32x5xbf16>
    %cst_197 = arith.constant dense<0.000000e+00> : vector<64x5xf32>
    %657 = tpu.matmul %655, %656, %cst_197 {dimension_numbers = #tpu.dot_dimension_numbers<[1], [0], [0], [1], [0, 0, 1, 1], [], []>} : vector<64x32xbf16>, vector<32x5xbf16>, vector<64x5xf32> -> vector<64x5xf32>
    %c0_198 = arith.constant 0 : index
    %c0_199 = arith.constant 0 : index
    %658 = vector.load %arg12[%c0_198, %c0_199] : memref<1x5xf32, #tpu.memory_space<vmem>>, vector<1x5xf32>
    %659 = vector.broadcast %658 : vector<1x5xf32> to vector<64x5xf32>
    %660 = arith.addf %657, %659 : vector<64x5xf32>
    %c0_200 = arith.constant 0 : index
    %c0_201 = arith.constant 0 : index
    %661 = vector.load %arg13[%c0_200, %c0_201] : memref<64x5xf32, #tpu.memory_space<vmem>>, vector<64x5xf32>
    tpu.vector_store %arg13[%c0_200, %c0_201], %660 {strides = array<i32>} : memref<64x5xf32, #tpu.memory_space<vmem>>, vector<64x5xf32>,
    return
  }
  func.func @transform_0(%arg0: i32) -> (i32, i32) {
    %c0_i32 = arith.constant 0 : i32
    %c0_i32_0 = arith.constant 0 : i32
    %c0_i32_1 = arith.constant 0 : i32
    return %c0_i32, %c0_i32_0 : i32, i32
  }
  func.func @transform_1(%arg0: i32) -> (i32, i32) {
    %c0_i32 = arith.constant 0 : i32
    %c0_i32_0 = arith.constant 0 : i32
    %c0_i32_1 = arith.constant 0 : i32
    return %c0_i32, %c0_i32_0 : i32, i32
  }
  func.func @transform_2(%arg0: i32) -> (i32, i32) {
    %c0_i32 = arith.constant 0 : i32
    %c0_i32_0 = arith.constant 0 : i32
    %c0_i32_1 = arith.constant 0 : i32
    return %c0_i32, %c0_i32_0 : i32, i32
  }
  func.func @transform_3(%arg0: i32) -> (i32, i32) {
    %c0_i32 = arith.constant 0 : i32
    %c0_i32_0 = arith.constant 0 : i32
    %c0_i32_1 = arith.constant 0 : i32
    return %c0_i32, %c0_i32_0 : i32, i32
  }
  func.func @transform_4(%arg0: i32) -> (i32, i32) {
    %c0_i32 = arith.constant 0 : i32
    %c0_i32_0 = arith.constant 0 : i32
    %c0_i32_1 = arith.constant 0 : i32
    return %c0_i32, %c0_i32_0 : i32, i32
  }
  func.func @transform_5(%arg0: i32) -> (i32, i32) {
    %c0_i32 = arith.constant 0 : i32
    %c0_i32_0 = arith.constant 0 : i32
    %c0_i32_1 = arith.constant 0 : i32
    return %c0_i32, %c0_i32_0 : i32, i32
  }
  func.func @transform_6(%arg0: i32) -> (i32, i32) {
    %c0_i32 = arith.constant 0 : i32
    %c0_i32_0 = arith.constant 0 : i32
    %c0_i32_1 = arith.constant 0 : i32
    return %c0_i32, %c0_i32_0 : i32, i32
  }
  func.func @transform_7(%arg0: i32) -> (i32, i32) {
    %c0_i32 = arith.constant 0 : i32
    %c0_i32_0 = arith.constant 0 : i32
    %c0_i32_1 = arith.constant 0 : i32
    return %c0_i32, %c0_i32_0 : i32, i32
  }
  func.func @transform_8(%arg0: i32) -> (i32, i32) {
    %c0_i32 = arith.constant 0 : i32
    %c0_i32_0 = arith.constant 0 : i32
    %c0_i32_1 = arith.constant 0 : i32
    return %c0_i32, %c0_i32_0 : i32, i32
  }
  func.func @transform_9(%arg0: i32) -> (i32, i32) {
    %c0_i32 = arith.constant 0 : i32
    %c0_i32_0 = arith.constant 0 : i32
    %c0_i32_1 = arith.constant 0 : i32
    return %c0_i32, %c0_i32_0 : i32, i32
  }
  func.func @transform_10(%arg0: i32) -> (i32, i32) {
    %c0_i32 = arith.constant 0 : i32
    %c0_i32_0 = arith.constant 0 : i32
    %c0_i32_1 = arith.constant 0 : i32
    return %c0_i32, %c0_i32_0 : i32, i32
  }
  func.func @transform_11(%arg0: i32) -> (i32, i32) {
    %c0_i32 = arith.constant 0 : i32
    %c0_i32_0 = arith.constant 0 : i32
    %c0_i32_1 = arith.constant 0 : i32
    return %c0_i32, %c0_i32_0 : i32, i32
  }
  func.func @transform_12(%arg0: i32) -> (i32, i32) {
    %c0_i32 = arith.constant 0 : i32
    %c0_i32_0 = arith.constant 0 : i32
    %c0_i32_1 = arith.constant 0 : i32
    return %c0_i32, %c0_i32_0 : i32, i32
  }
}

</mosaic_0001>

<bundles_post_ra>
// kernel: tpu_custom_call.1
= control target key start
LH: loop header
LB: loop body
LE: loop exit
PB: predicated region body
PF: predicated region fallthrough
CT: control target
= control target key end

     0   :  { %17 = vsyncpa [#allocation3], 0  ;;  %s2715_s21 = smov [#allocation2]   ;;  %s3383_s0 = inlined_call_operand.vmem [shape: f32[64,16], index: 0, kind: input, shape index: {}]   ;;  %s3384_s1 = inlined_call_operand.hbm [shape: bf16[16,128], index: 1, kind: input, shape index: {}]   ;;  %s3385_s2 = inlined_call_operand.vmem [shape: bf16[32,128], index: 2, kind: input, shape index: {}]   ;;  %s3386_s3 = inlined_call_operand.vmem [shape: f32[1,128], index: 3, kind: input, shape index: {}]   ;;  %s3387_s4 = inlined_call_operand.vmem [shape: bf16[32,128], index: 4, kind: input, shape index: {}]   ;;  %s3388_s5 = inlined_call_operand.vmem [shape: bf16[32,128], index: 5, kind: input, shape index: {}]   ;;  %s3389_s6 = inlined_call_operand.vmem [shape: f32[1,128], index: 6, kind: input, shape index: {}]   ;;  %s3390_s7 = inlined_call_operand.vmem [shape: bf16[32,128], index: 7, kind: input, shape index: {}]   ;;  %s3391_s8 = inlined_call_operand.vmem [shape: bf16[32,128], index: 8, kind: input, shape index: {}]   ;;  %s3392_s9 = inlined_call_operand.vmem [shape: f32[1,128], index: 9, kind: input, shape index: {}]   ;;  %s3393_s10 = inlined_call_operand.vmem [shape: bf16[32,5], index: 10, kind: input, shape index: {}]   ;;  %s3394_s11 = inlined_call_operand.vmem [shape: f32[1,5], index: 11, kind: input, shape index: {}]   ;;  %s3395_s12 = inlined_call_operand.vmem [shape: f32[64,5], index: 12, kind: output, shape index: {}]  }
   0x1   :  { %s25_s22 = sshll.u32 %s2715_s21, 4  ;;  %s2691_s25 = scalar_lea.hbm %s3384_s1, 128  ;;  %s26_s22 = int_to_ptr.vmem [resolvable:$true] %s25_s22 }
   0x2   :  { %p2692_p0 = scmp.ne.s32.totalorder %s3384_s1, %s2691_s25  ;;  %p2695_p1 = scmp.lt.u32.totalorder %s2691_s25, %s3384_s1 }
   0x4   :  { %p2697_p2 = pnand %p2695_p1, %p2692_p0 }
   0x6   :  { %2700 = shalt.err (!%p2697_p2)
}
   0x7   :  { %s2701_s30 = scalar_lea.vmem %s26_s22, 128  ;;  %p2706_p4 = scmp.lt.s32.totalorder %s26_s22, %s26_s22 }
   0x8   :  { %p2702_p3 = scmp.ne.s32.totalorder %s26_s22, %s2701_s30  ;;  %p2707_p5 = scmp.lt.s32.totalorder %s2701_s30, %s2701_s30 }
   0xa   :  { %p2708_p6 = por %p2707_p5, %p2706_p4 }
   0xc   :  { %p2709_p7 = pnand %p2708_p6, %p2702_p3 }
   0xe   :  { %2712 = shalt.err (!%p2709_p7)
}
   0xf   :  { %s2716_s13 = smov 64   ;;  %s2717_s14 = smov 4  }
  0x10   :  { %31 = dma.hbm_to_vmem [thread:$0]  %s3384_s1, 128, %s26_s22, [#allocation3], %s2716_s13, %s2716_s13, %s2717_s14  }
  0x11   :  { %2713 = dma.done.wait [#allocation3], 128  }
  0x12   :  { %2714 = vsyncadd [#allocation3], 4294967168  ;;  %v2582_v0 = vld [vmem:[#allocation2] sm:$0xff]   ;;  %v61_v2 = vld [vmem:[%s3383_s0 + $0x28] sm:$0xff]  ;;  %vm83_vm0 = vcmask 130048   ;;  %v2718_v10 = vmov 0.0  }
  0x13   :  { %v60_v1 = vld [vmem:[%s3383_s0 + $0x20] sm:$0xff]  ;;  %v62_v3 = vld [vmem:[%s3383_s0 + $0x30] sm:$0xff]  ;;  %2573 = vmatprep.subr.bf16.mxu1 %v2582_v0  ;;  %2335 = vmatprep.subr.bf16.mxu0 %v2582_v0  ;;  %v63_v5 = vld [vmem:[%s3383_s0 + $0x38] sm:$0xff]  ;;  %vm2719_vm1 = vmmov 0   ;;  %v2720_v16 = vmov 0   ;;  %vm177_vm2 = vcmask 261120  }
  0x14   :  { %v66_v4 = vpack.c.bf16 %v61_v2, %v60_v1  ;;  %2574 = vmatpush3.bf16.msra.mxu1 %v2582_v0  ;;  %2336 = vmatpush3.bf16.msra.mxu0 %v2582_v0  ;;  %v67_v6 = vpack.c.bf16 %v63_v5, %v62_v3  ;;  %v2816_v7 = vld [vmem:[%s3385_s2] sm:$0xff]   ;;  %v57_v9 = vld [vmem:[%s3383_s0 + $0x8] sm:$0xff]  ;;  %v58_v12 = vld [vmem:[%s3383_s0 + $0x10] sm:$0xff]  ;;  %vm2172_vm3 = vcmask 39936  }
  0x15   :  { %v56_v8 = vld [vmem:[%s3383_s0] sm:$0xff]  ;;  %2345 = vmatprep.subr.bf16.mxu1 %v2718_v10  ;;  %v59_v13 = vld [vmem:[%s3383_s0 + $0x18] sm:$0xff]  ;;  %v2835_v15 = vld [vmem:[%s3385_s2 + $0x8] sm:$0xff]   ;;  %2361 = vmatprep.subr.bf16.mxu0 %v2718_v10 }
  0x16   :  { %2341 = vmatprep.mubr.msk.bf16.mxu1 %vm83_vm0, %v66_v4  ;;  %v64_v11 = vpack.c.bf16 %v57_v9, %v56_v8  ;;  %v65_v14 = vpack.c.bf16 %v59_v13, %v58_v12  ;;  %v2186_v17 = vld [vmem:[%s3386_s3] ss:$0 sm:$0xff]  ;;  %s2721_s3 = smov 32  }
  0x17   :  { %2342 = vmatmul.mubr.msk.bf16.vlgmr.msra.gmra.mrb[0].mxu1 %vm83_vm0, %v67_v6 }
  0x18   :  { %2337 = vmatprep.mubr.msk.bf16.mxu0 %vm83_vm0, %v64_v11  ;;  %2346 = vmatpush3.bf16.msra.mxu1 %v2816_v7 }
  0x19   :  { %2338 = vmatmul.mubr.msk.bf16.vlgmr.msra.gmra.mrb[0].mxu0 %vm83_vm0, %v65_v14  ;;  %2347 = vmatprep.subr.bf16.mxu1 %v2718_v10 }
  0x1a   :  { %2349 = vmatprep.mubr.msk.bf16.mxu1 %vm2719_vm1, %v2718_v10  ;;  %2362 = vmatpush3.bf16.msra.mxu0 %v2816_v7 }
  0x1b   :  { %2365 = vmatprep.mubr.msk.bf16.mxu0 %vm2719_vm1, %v2718_v10  ;;  %2363 = vmatprep.subr.bf16.mxu0 %v2718_v10 }
  0x1c   :  { %2348 = vmatpush3.bf16.msra.mxu1 %v2835_v15 }
  0x1d   :  { %2353 = vmatprep.subr.bf16.mxu1 %v2718_v10 }
  0x1e   :  { %2364 = vmatpush3.bf16.msra.mxu0 %v2835_v15 }
  0x1f   :  { %2350 = vmatmul.mubr.bf16.vlgmr.msra.gmra.mrb[4].mxu1 %v2720_v16  ;;  %2377 = vmatprep.subr.bf16.mxu0 %v2718_v10 }
  0x20   :  { %2354 = vmatpush3.bf16.msra.mxu1 %v2816_v7  ;;  %2357 = vmatprep.mubr.msk.bf16.mxu1 %vm2719_vm1, %v2718_v10 }
  0x21   :  { %2355 = vmatprep.subr.bf16.mxu1 %v2718_v10 }
  0x24   :  { %2356 = vmatpush3.bf16.msra.mxu1 %v2835_v15 }
  0x25   :  { %2369 = vmatprep.subr.bf16.mxu1 %v2718_v10 }
  0xea   :  { %v2343_v18 = vpop.f32.mrb[0].mxu1 }
  0xeb   :  { %v2863_v19 = vadd.f32 %v2343_v18, %v2186_v17  ;;  %v146_v20 = vpop.f32.mrb[1].mxu1 }
  0xec   :  { %v2339_v21 = vpop.f32.mrb[0].mxu0  ;;  %v2865_v22 = vadd.f32 %v2186_v17, %v146_v20  ;;  %v2344_v23 = vpop.f32.mrb[2].mxu1 }
  0xed   :  { %v2867_v24 = vadd.f32 %v2339_v21, %v2186_v17  ;;  %v130_v25 = vpop.f32.mrb[1].mxu0  ;;  %v2869_v26 = vadd.f32 %v2344_v23, %v2186_v17  ;;  %v149_v27 = vpop.f32.mrb[3].mxu1 }
  0xee   :  { %v2340_v28 = vpop.f32.mrb[2].mxu0  ;;  %v2871_v29 = vadd.f32 %v2186_v17, %v149_v27  ;;  %v131_v32 = vadd.f32 %v2186_v17, %v130_v25 }
  0xef   :  { %v2873_v30 = vadd.f32 %v2340_v28, %v2186_v17  ;;  %v133_v31 = vpop.f32.mrb[3].mxu0 }
  0xf0   :  { %v134_v33 = vadd.f32 %v2186_v17, %v133_v31 }
  0xf2   :  { %v215_v34 = vpop.f32.mrb[4].mxu1 }
  0xf3   :  { %v221_v35 = vadd.f32 %v215_v34, %v131_v32  ;;  %v2351_v36 = vpop.f32.mrb[5].mxu1 }
  0xf4   :  { %v218_v37 = vpop.f32.mrb[6].mxu1 }
  0xf5   :  { %2595 = vtanh.f32 %v221_v35  ;;  %v2352_v38 = vpop.f32.mrb[7].mxu1 }
  0xff   :  { %v2596_v39 = vpop.eup %2595 }
 0x100   :  { %227 = vrot.lane.b32.xlu0 %v2596_v39, %s2716_s13  ;;  %v223_v40 = vmul.f32 0.5, %v2596_v39 }
 0x102   :  { %v224_v41 = vadd.f32 0.5, %v223_v40 }
 0x104   :  { %v225_v44 = vmul.f32 0.0, %v224_v41 }
 0x172   :  { %v228_v42 = vpop.permute.xlu0 %227 }
 0x173   :  { %v230_v43 = vmul.f32 %v228_v42, %v224_v41 }
 0x175   :  { %232 = vrot.lane.b32.xlu0 %v230_v43, %s2721_s3 }
 0x1e7   :  { %v233_v45 = vpop.permute.xlu0 %232 }
 0x1e8   :  { %v235_v46 = vadd.f32 %v233_v45, %v225_v44 }
 0x1ea   :  { %2597 = vtanh.f32 %v235_v46 }
 0x1f4   :  { %v2598_v47 = vpop.eup %2597 }
 0x1f5   :  { %238 = vrot.lane.b32.xlu1 %v2598_v47, %s2716_s13 }
 0x267   :  { %v239_v48 = vpop.permute.xlu1 %238 }
 0x268   :  { %v2878_v49 = vmul.f32 %v239_v48, %v224_v41 }
 0x26a   :  { %v242_v50 = vpack.c.bf16 %v2878_v49, %v2878_v49 }
 0x26c   :  { %244 = vrot.lane.b32.xlu1 %v242_v50, %s2721_s3 }
 0x2de   :  { %v245_v51 = vpop.permute.xlu1 %244 }
 0x2df   :  { %2358 = vmatmul.mubr.msk.bf16.vlgmr.msra.gmra.mrb[8].mxu1 %vm177_vm2, %v245_v51 }
 0x2e0   :  { %2370 = vmatpush3.bf16.msra.mxu1 %v2816_v7  ;;  %2373 = vmatprep.mubr.msk.bf16.mxu1 %vm2719_vm1, %v2718_v10 }
 0x2e1   :  { %2371 = vmatprep.subr.bf16.mxu1 %v2718_v10 }
 0x2e4   :  { %2372 = vmatpush3.bf16.msra.mxu1 %v2835_v15 }
 0x2e5   :  { %2385 = vmatprep.subr.bf16.mxu1 %v2718_v10 }
 0x3b2   :  { %v283_v52 = vpop.f32.mrb[8].mxu1 }
 0x3b3   :  { %v289_v53 = vadd.f32 %v283_v52, %v134_v33  ;;  %v2359_v54 = vpop.f32.mrb[9].mxu1 }
 0x3b4   :  { %v286_v55 = vpop.f32.mrb[10].mxu1 }
 0x3b5   :  { %2599 = vtanh.f32 %v289_v53  ;;  %v2360_v56 = vpop.f32.mrb[11].mxu1 }
 0x3bf   :  { %v2600_v57 = vpop.eup %2599 }
 0x3c0   :  { %295 = vrot.lane.b32.xlu0 %v2600_v57, %s2716_s13  ;;  %v291_v58 = vmul.f32 0.5, %v2600_v57 }
 0x3c2   :  { %v292_v59 = vadd.f32 0.5, %v291_v58 }
 0x3c4   :  { %v293_v62 = vmul.f32 %v292_v59, %v235_v46 }
 0x432   :  { %v296_v60 = vpop.permute.xlu0 %295 }
 0x433   :  { %v298_v61 = vmul.f32 %v296_v60, %v292_v59 }
 0x435   :  { %300 = vrot.lane.b32.xlu1 %v298_v61, %s2721_s3 }
 0x4a7   :  { %v301_v63 = vpop.permute.xlu1 %300 }
 0x4a8   :  { %v303_v0 = vadd.f32 %v301_v63, %v293_v62 }
 0x4aa   :  { %2601 = vtanh.f32 %v303_v0 }
 0x4b4   :  { %v2602_v1 = vpop.eup %2601 }
 0x4b5   :  { %306 = vrot.lane.b32.xlu0 %v2602_v1, %s2716_s13 }
 0x527   :  { %v307_v2 = vpop.permute.xlu0 %306 }
 0x528   :  { %v2893_v3 = vmul.f32 %v307_v2, %v292_v59 }
 0x52a   :  { %v310_v4 = vpack.c.bf16 %v2893_v3, %v2893_v3 }
 0x52c   :  { %312 = vrot.lane.b32.xlu1 %v310_v4, %s2721_s3 }
 0x59e   :  { %v313_v5 = vpop.permute.xlu1 %312 }
 0x59f   :  { %2366 = vmatmul.mubr.msk.bf16.vlgmr.msra.gmra.mrb[4].mxu0 %vm177_vm2, %v313_v5 }
 0x5a0   :  { %2378 = vmatpush3.bf16.msra.mxu0 %v2816_v7  ;;  %2381 = vmatprep.mubr.msk.bf16.mxu0 %vm2719_vm1, %v2718_v10 }
 0x5a1   :  { %2379 = vmatprep.subr.bf16.mxu0 %v2718_v10 }
 0x5a4   :  { %2380 = vmatpush3.bf16.msra.mxu0 %v2835_v15 }
 0x5a5   :  { %2393 = vmatprep.subr.bf16.mxu0 %v2718_v10 }
 0x672   :  { %v351_v6 = vpop.f32.mrb[4].mxu0 }
 0x673   :  { %v357_v8 = vadd.f32 %v351_v6, %v2867_v24  ;;  %v2367_v9 = vpop.f32.mrb[5].mxu0 }
 0x674   :  { %v354_v11 = vpop.f32.mrb[6].mxu0 }
 0x675   :  { %2603 = vtanh.f32 %v357_v8  ;;  %v2368_v12 = vpop.f32.mrb[7].mxu0 }
 0x67f   :  { %v2604_v13 = vpop.eup %2603 }
 0x680   :  { %363 = vrot.lane.b32.xlu0 %v2604_v13, %s2716_s13  ;;  %v359_v14 = vmul.f32 0.5, %v2604_v13 }
 0x682   :  { %v360_v17 = vadd.f32 0.5, %v359_v14 }
 0x684   :  { %v361_v21 = vmul.f32 %v360_v17, %v303_v0 }
 0x6f2   :  { %v364_v18 = vpop.permute.xlu0 %363 }
 0x6f3   :  { %v366_v20 = vmul.f32 %v364_v18, %v360_v17 }
 0x6f5   :  { %368 = vrot.lane.b32.xlu1 %v366_v20, %s2721_s3 }
 0x767   :  { %v369_v23 = vpop.permute.xlu1 %368 }
 0x768   :  { %v371_v25 = vadd.f32 %v369_v23, %v361_v21 }
 0x76a   :  { %2605 = vtanh.f32 %v371_v25 }
 0x774   :  { %v2606_v27 = vpop.eup %2605 }
 0x775   :  { %374 = vrot.lane.b32.xlu0 %v2606_v27, %s2716_s13 }
 0x7e7   :  { %v375_v24 = vpop.permute.xlu0 %374 }
 0x7e8   :  { %v2909_v28 = vmul.f32 %v375_v24, %v360_v17 }
 0x7ea   :  { %v378_v31 = vpack.c.bf16 %v2909_v28, %v2909_v28 }
 0x7ec   :  { %380 = vrot.lane.b32.xlu1 %v378_v31, %s2721_s3 }
 0x85e   :  { %v381_v32 = vpop.permute.xlu1 %380 }
 0x85f   :  { %2374 = vmatmul.mubr.msk.bf16.vlgmr.msra.gmra.mrb[12].mxu1 %vm177_vm2, %v381_v32 }
 0x860   :  { %2386 = vmatpush3.bf16.msra.mxu1 %v2816_v7  ;;  %2389 = vmatprep.mubr.msk.bf16.mxu1 %vm2719_vm1, %v2718_v10 }
 0x861   :  { %2387 = vmatprep.subr.bf16.mxu1 %v2718_v10 }
 0x864   :  { %2388 = vmatpush3.bf16.msra.mxu1 %v2835_v15 }
 0x865   :  { %2401 = vmatprep.subr.bf16.mxu1 %v2718_v10 }
 0x932   :  { %v419_v33 = vpop.f32.mrb[12].mxu1 }
 0x933   :  { %v425_v34 = vadd.f32 %v419_v33, %v2873_v30  ;;  %v2375_v35 = vpop.f32.mrb[13].mxu1 }
 0x934   :  { %v422_v36 = vpop.f32.mrb[14].mxu1 }
 0x935   :  { %2607 = vtanh.f32 %v425_v34  ;;  %v2376_v37 = vpop.f32.mrb[15].mxu1 }
 0x93f   :  { %v2608_v38 = vpop.eup %2607 }
 0x940   :  { %431 = vrot.lane.b32.xlu0 %v2608_v38, %s2716_s13  ;;  %v427_v39 = vmul.f32 0.5, %v2608_v38 }
 0x942   :  { %v428_v40 = vadd.f32 0.5, %v427_v39 }
 0x944   :  { %v429_v43 = vmul.f32 %v428_v40, %v371_v25 }
 0x9b2   :  { %v432_v41 = vpop.permute.xlu0 %431 }
 0x9b3   :  { %v434_v42 = vmul.f32 %v432_v41, %v428_v40 }
 0x9b5   :  { %436 = vrot.lane.b32.xlu1 %v434_v42, %s2721_s3 }
 0xa27   :  { %v437_v44 = vpop.permute.xlu1 %436 }
 0xa28   :  { %v439_v45 = vadd.f32 %v437_v44, %v429_v43  ;;  %v718_v44 = vpack.c.bf16 %v2893_v3, %v2878_v49  ;;  %v2991_v3 = vld [vmem:[%s3388_s5] sm:$0xff]  }
 0xa2a   :  { %2609 = vtanh.f32 %v439_v45 }
 0xa34   :  { %v2610_v46 = vpop.eup %2609 }
 0xa35   :  { %442 = vrot.lane.b32.xlu0 %v2610_v46, %s2716_s13 }
 0xaa7   :  { %v443_v30 = vpop.permute.xlu0 %442 }
 0xaa8   :  { %v2925_v47 = vmul.f32 %v443_v30, %v428_v40 }
 0xaaa   :  { %v446_v48 = vpack.c.bf16 %v2925_v47, %v2925_v47  ;;  %v719_v49 = vpack.c.bf16 %v2925_v47, %v2909_v28 }
 0xaac   :  { %448 = vrot.lane.b32.xlu1 %v446_v48, %s2721_s3 }
 0xb1e   :  { %v449_v50 = vpop.permute.xlu1 %448 }
 0xb1f   :  { %2382 = vmatmul.mubr.msk.bf16.vlgmr.msra.gmra.mrb[8].mxu0 %vm177_vm2, %v449_v50 }
 0xb20   :  { %2394 = vmatpush3.bf16.msra.mxu0 %v2816_v7  ;;  %2397 = vmatprep.mubr.msk.bf16.mxu0 %vm2719_vm1, %v2718_v10 }
 0xb21   :  { %2395 = vmatprep.subr.bf16.mxu0 %v2718_v10 }
 0xb24   :  { %2396 = vmatpush3.bf16.msra.mxu0 %v2835_v15 }
 0xbf2   :  { %v487_v51 = vpop.f32.mrb[8].mxu0 }
 0xbf3   :  { %v493_v52 = vadd.f32 %v487_v51, %v2865_v22  ;;  %v2383_v53 = vpop.f32.mrb[9].mxu0 }
 0xbf4   :  { %v490_v54 = vpop.f32.mrb[10].mxu0 }
 0xbf5   :  { %2611 = vtanh.f32 %v493_v52  ;;  %v2384_v55 = vpop.f32.mrb[11].mxu0  ;;  %v2998_v52 = vld [vmem:[%s3388_s5 + $0x8] sm:$0xff]  }
 0xbff   :  { %v2612_v56 = vpop.eup %2611 }
 0xc00   :  { %499 = vrot.lane.b32.xlu0 %v2612_v56, %s2716_s13  ;;  %v495_v57 = vmul.f32 0.5, %v2612_v56 }
 0xc02   :  { %v496_v58 = vadd.f32 0.5, %v495_v57  ;;  %v3021_v57 = vld [vmem:[%s3389_s6] ss:$0 sm:$0xff] }
 0xc04   :  { %v497_v61 = vmul.f32 %v496_v58, %v439_v45  ;;  %v2586_v45 = vld [vmem:[%s3387_s4 + $0x8] sm:$0xff]  }
 0xc72   :  { %v500_v59 = vpop.permute.xlu0 %499 }
 0xc73   :  { %v502_v60 = vmul.f32 %v500_v59, %v496_v58 }
 0xc75   :  { %504 = vrot.lane.b32.xlu1 %v502_v60, %s2721_s3 }
 0xce7   :  { %v505_v62 = vpop.permute.xlu1 %504 }
 0xce8   :  { %v507_v63 = vadd.f32 %v505_v62, %v497_v61 }
 0xcea   :  { %2613 = vtanh.f32 %v507_v63 }
 0xcf4   :  { %v2614_v0 = vpop.eup %2613 }
 0xcf5   :  { %510 = vrot.lane.b32.xlu0 %v2614_v0, %s2716_s13 }
 0xd67   :  { %v511_v22 = vpop.permute.xlu0 %510 }
 0xd68   :  { %v2940_v1 = vmul.f32 %v511_v22, %v496_v58 }
 0xd6a   :  { %v514_v2 = vpack.c.bf16 %v2940_v1, %v2940_v1 }
 0xd6c   :  { %516 = vrot.lane.b32.xlu1 %v514_v2, %s2721_s3 }
 0xdde   :  { %v517_v4 = vpop.permute.xlu1 %516 }
 0xddf   :  { %2390 = vmatmul.mubr.msk.bf16.vlgmr.msra.gmra.mrb[16].mxu1 %vm177_vm2, %v517_v4 }
 0xde0   :  { %2402 = vmatpush3.bf16.msra.mxu1 %v2816_v7  ;;  %2405 = vmatprep.mubr.msk.bf16.mxu1 %vm2719_vm1, %v2718_v10 }
 0xde1   :  { %2403 = vmatprep.subr.bf16.mxu1 %v2718_v10 }
 0xde4   :  { %2404 = vmatpush3.bf16.msra.mxu1 %v2835_v15 }
 0xde5   :  { %2421 = vmatprep.subr.bf16.mxu1 %v2718_v10 }
 0xeb2   :  { %v555_v5 = vpop.f32.mrb[16].mxu1 }
 0xeb3   :  { %v561_v6 = vadd.f32 %v555_v5, %v2871_v29  ;;  %v2391_v8 = vpop.f32.mrb[17].mxu1 }
 0xeb4   :  { %v558_v9 = vpop.f32.mrb[18].mxu1 }
 0xeb5   :  { %2615 = vtanh.f32 %v561_v6  ;;  %v2392_v11 = vpop.f32.mrb[19].mxu1 }
 0xebf   :  { %v2616_v12 = vpop.eup %2615 }
 0xec0   :  { %567 = vrot.lane.b32.xlu0 %v2616_v12, %s2716_s13  ;;  %v563_v7 = vmul.f32 0.5, %v2616_v12 }
 0xec2   :  { %v564_v13 = vadd.f32 0.5, %v563_v7 }
 0xec4   :  { %v565_v18 = vmul.f32 %v564_v13, %v507_v63 }
 0xf32   :  { %v568_v14 = vpop.permute.xlu0 %567 }
 0xf33   :  { %v570_v17 = vmul.f32 %v568_v14, %v564_v13 }
 0xf35   :  { %572 = vrot.lane.b32.xlu1 %v570_v17, %s2721_s3 }
 0xfa7   :  { %v573_v15 = vpop.permute.xlu1 %572 }
 0xfa8   :  { %v575_v20 = vadd.f32 %v573_v15, %v565_v18 }
 0xfaa   :  { %2617 = vtanh.f32 %v575_v20 }
 0xfb4   :  { %v2618_v21 = vpop.eup %2617 }
 0xfb5   :  { %578 = vrot.lane.b32.xlu0 %v2618_v21, %s2716_s13 }
0x1027   :  { %v579_v29 = vpop.permute.xlu0 %578 }
0x1028   :  { %v2956_v23 = vmul.f32 %v579_v29, %v564_v13 }
0x102a   :  { %v582_v25 = vpack.c.bf16 %v2956_v23, %v2956_v23 }
0x102c   :  { %584 = vrot.lane.b32.xlu1 %v582_v25, %s2721_s3 }
0x109e   :  { %v585_v27 = vpop.permute.xlu1 %584 }
0x109f   :  { %2398 = vmatmul.mubr.msk.bf16.vlgmr.msra.gmra.mrb[12].mxu0 %vm177_vm2, %v585_v27 }
0x1172   :  { %v623_v24 = vpop.f32.mrb[12].mxu0 }
0x1173   :  { %v629_v31 = vadd.f32 %v623_v24, %v2863_v19  ;;  %v2399_v32 = vpop.f32.mrb[13].mxu0  ;;  %v2585_v19 = vld [vmem:[%s3387_s4] sm:$0xff]  }
0x1174   :  { %v626_v33 = vpop.f32.mrb[14].mxu0  ;;  %2409 = vmatprep.subr.bf16.mxu0 %v2585_v19 }
0x1175   :  { %2619 = vtanh.f32 %v629_v31  ;;  %v2400_v34 = vpop.f32.mrb[15].mxu0  ;;  %2410 = vmatpush3.bf16.msra.mxu0 %v2585_v19 }
0x1176   :  { %2411 = vmatprep.subr.bf16.mxu0 %v2586_v45  ;;  %v720_v34 = vpack.c.bf16 %v2956_v23, %v2940_v1 }
0x1179   :  { %2412 = vmatpush3.bf16.msra.mxu0 %v2586_v45 }
0x117a   :  { %2437 = vmatprep.subr.bf16.mxu0 %v2718_v10 }
0x117f   :  { %v2620_v35 = vpop.eup %2619 }
0x1180   :  { %635 = vrot.lane.b32.xlu0 %v2620_v35, %s2716_s13  ;;  %v631_v36 = vmul.f32 0.5, %v2620_v35 }
0x1182   :  { %v632_v37 = vadd.f32 0.5, %v631_v36 }
0x1184   :  { %v633_v40 = vmul.f32 %v632_v37, %v575_v20 }
0x11f2   :  { %v636_v38 = vpop.permute.xlu0 %635 }
0x11f3   :  { %v638_v39 = vmul.f32 %v636_v38, %v632_v37 }
0x11f5   :  { %640 = vrot.lane.b32.xlu1 %v638_v39, %s2721_s3 }
0x1267   :  { %v641_v41 = vpop.permute.xlu1 %640 }
0x1268   :  { %v2965_v42 = vadd.f32 %v641_v41, %v633_v40 }
0x126a   :  { %2621 = vtanh.f32 %v2965_v42 }
0x1274   :  { %v2622_v43 = vpop.eup %2621 }
0x1275   :  { %646 = vrot.lane.b32.xlu0 %v2622_v43, %s2716_s13 }
0x1279   :  { %737 = vrot.lane.b32.xlu0 %v718_v44, %s2721_s3 }
0x12e7   :  { %v647_v46 = vpop.permute.xlu0 %646 }
0x12e8   :  { %v2979_v30 = vmul.f32 %v647_v46, %v632_v37 }
0x12ea   :  { %v650_v48 = vpack.c.bf16 %v2979_v30, %v2979_v30 }
0x12eb   :  { %v738_v50 = vpop.permute.xlu0 %737 }
0x12ec   :  { %652 = vrot.lane.b32.xlu1 %v650_v48, %s2721_s3  ;;  %2413 = vmatprep.mubr.msk.bf16.mxu0 %vm177_vm2, %v738_v50 }
0x12f0   :  { %739 = vrot.lane.b32.xlu1 %v719_v49, %s2721_s3 }
0x135e   :  { %v653_v51 = vpop.permute.xlu1 %652 }
0x135f   :  { %2406 = vmatmul.mubr.msk.bf16.vlgmr.msra.gmra.mrb[20].mxu1 %vm177_vm2, %v653_v51 }
0x1360   :  { %2422 = vmatpush3.bf16.msra.mxu1 %v2991_v3  ;;  %2425 = vmatprep.mubr.msk.bf16.mxu1 %vm2719_vm1, %v2718_v10 }
0x1361   :  { %2423 = vmatprep.subr.bf16.mxu1 %v2718_v10 }
0x1362   :  { %v740_v28 = vpop.permute.xlu1 %739 }
0x1363   :  { %2414 = vmatmul.mubr.msk.bf16.vlgmr.msra.gmra.mrb[16].mxu0 %vm177_vm2, %v740_v28 }
0x1364   :  { %2424 = vmatpush3.bf16.msra.mxu1 %v2998_v52  ;;  %2438 = vmatpush3.bf16.msra.mxu0 %v2991_v3 }
0x1365   :  { %2429 = vmatprep.subr.bf16.mxu1 %v2718_v10  ;;  %2439 = vmatprep.subr.bf16.mxu0 %v2718_v10 }
0x1367   :  { %2426 = vmatmul.mubr.bf16.vlgmr.msra.gmra.mrb[24].mxu1 %v2720_v16 }
0x1368   :  { %2430 = vmatpush3.bf16.msra.mxu1 %v2991_v3  ;;  %2433 = vmatprep.mubr.msk.bf16.mxu1 %vm2719_vm1, %v2718_v10 }
0x1369   :  { %2431 = vmatprep.subr.bf16.mxu1 %v2718_v10  ;;  %2440 = vmatpush3.bf16.msra.mxu0 %v2998_v52 }
0x136a   :  { %2453 = vmatprep.subr.bf16.mxu0 %v2718_v10 }
0x136c   :  { %2432 = vmatpush3.bf16.msra.mxu1 %v2998_v52 }
0x136d   :  { %2445 = vmatprep.subr.bf16.mxu1 %v2718_v10 }
0x1432   :  { %v691_v47 = vpop.f32.mrb[20].mxu1 }
0x1433   :  { %v697_v53 = vadd.f32 %v691_v47, %v2869_v26  ;;  %v2407_v54 = vpop.f32.mrb[21].mxu1 }
0x1434   :  { %v694_v55 = vpop.f32.mrb[22].mxu1 }
0x1435   :  { %v2408_v56 = vpop.f32.mrb[23].mxu1 }
0x1436   :  { %v3023_v58 = vpop.f32.mrb[16].mxu0 }
0x1437   :  { %v803_v59 = vpop.f32.mrb[17].mxu0 }
0x1438   :  { %v804_v60 = vadd.f32 %v3021_v57, %v803_v59  ;;  %v3026_v61 = vpop.f32.mrb[18].mxu0 }
0x1439   :  { %v806_v62 = vpop.f32.mrb[19].mxu0 }
0x143a   :  { %v884_v63 = vpop.f32.mrb[24].mxu1  ;;  %v807_v37 = vadd.f32 %v3021_v57, %v806_v62  ;;  %v812_v62 = vadd.f32 %v3023_v58, %v3021_v57 }
0x143b   :  { %v890_v0 = vadd.f32 %v884_v63, %v804_v60  ;;  %v2427_v22 = vpop.f32.mrb[25].mxu1 }
0x143c   :  { %v887_v26 = vpop.f32.mrb[26].mxu1 }
0x143d   :  { %2623 = vtanh.f32 %v890_v0  ;;  %v2428_v2 = vpop.f32.mrb[27].mxu1 }
0x1447   :  { %v2624_v4 = vpop.eup %2623 }
0x1448   :  { %896 = vrot.lane.b32.xlu0 %v2624_v4, %s2716_s13  ;;  %v892_v5 = vmul.f32 0.5, %v2624_v4 }
0x144a   :  { %v893_v6 = vadd.f32 0.5, %v892_v5 }
0x144c   :  { %v894_v11 = vmul.f32 0.0, %v893_v6 }
0x14ba   :  { %v897_v8 = vpop.permute.xlu0 %896 }
0x14bb   :  { %v899_v9 = vmul.f32 %v897_v8, %v893_v6 }
0x14bd   :  { %901 = vrot.lane.b32.xlu1 %v899_v9, %s2721_s3 }
0x152f   :  { %v902_v12 = vpop.permute.xlu1 %901 }
0x1530   :  { %v904_v7 = vadd.f32 %v902_v12, %v894_v11 }
0x1532   :  { %2625 = vtanh.f32 %v904_v7 }
0x1533   :  { %2627 = vtanh.f32 %v697_v53 }
0x153c   :  { %v2626_v13 = vpop.eup %2625 }
0x153d   :  { %907 = vrot.lane.b32.xlu0 %v2626_v13, %s2716_s13  ;;  %v2628_v14 = vpop.eup %2627 }
0x153e   :  { %v699_v17 = vmul.f32 0.5, %v2628_v14 }
0x1540   :  { %v700_v21 = vadd.f32 0.5, %v699_v17 }
0x1541   :  { %703 = vrot.lane.b32.xlu0 %v2628_v14, %s2716_s13 }
0x1542   :  { %v701_v24 = vmul.f32 %v700_v21, %v2965_v42 }
0x15af   :  { %v908_v18 = vpop.permute.xlu0 %907 }
0x15b0   :  { %v3032_v15 = vmul.f32 %v908_v18, %v893_v6 }
0x15b2   :  { %v911_v20 = vpack.c.bf16 %v3032_v15, %v3032_v15 }
0x15b3   :  { %v704_v29 = vpop.permute.xlu0 %703 }
0x15b4   :  { %v706_v25 = vmul.f32 %v704_v29, %v700_v21  ;;  %913 = vrot.lane.b32.xlu1 %v911_v20, %s2721_s3  ;;  %v815_v20 = vadd.f32 %v3026_v61, %v3021_v57 }
0x15b6   :  { %708 = vrot.lane.b32.xlu0 %v706_v25, %s2721_s3 }
0x1626   :  { %v914_v27 = vpop.permute.xlu1 %913 }
0x1627   :  { %2434 = vmatmul.mubr.msk.bf16.vlgmr.msra.gmra.mrb[28].mxu1 %vm177_vm2, %v914_v27 }
0x1628   :  { %v709_v31 = vpop.permute.xlu0 %708  ;;  %2446 = vmatpush3.bf16.msra.mxu1 %v2991_v3  ;;  %2449 = vmatprep.mubr.msk.bf16.mxu1 %vm2719_vm1, %v2718_v10 }
0x1629   :  { %v711_v32 = vadd.f32 %v709_v31, %v701_v24  ;;  %2447 = vmatprep.subr.bf16.mxu1 %v2718_v10 }
0x162b   :  { %2629 = vtanh.f32 %v711_v32 }
0x162c   :  { %2448 = vmatpush3.bf16.msra.mxu1 %v2998_v52 }
0x162d   :  { %2461 = vmatprep.subr.bf16.mxu1 %v2718_v10 }
0x1635   :  { %v2630_v33 = vpop.eup %2629 }
0x1636   :  { %714 = vrot.lane.b32.xlu0 %v2630_v33, %s2716_s13 }
0x163a   :  { %741 = vrot.lane.b32.xlu0 %v720_v34, %s2721_s3 }
0x16a8   :  { %v715_v35 = vpop.permute.xlu0 %714 }
0x16a9   :  { %v717_v50 = vmul.f32 %v715_v35, %v700_v21 }
0x16ab   :  { %v721_v51 = vpack.c.bf16 %v717_v50, %v2979_v30 }
0x16ac   :  { %v742_v36 = vpop.permute.xlu0 %741 }
0x16ad   :  { %2417 = vmatprep.mubr.msk.bf16.mxu0 %vm177_vm2, %v742_v36 }
0x16fa   :  { %v952_v38 = vpop.f32.mrb[28].mxu1 }
0x16fb   :  { %v958_v39 = vadd.f32 %v952_v38, %v807_v37  ;;  %v2435_v40 = vpop.f32.mrb[29].mxu1 }
0x16fc   :  { %v955_v41 = vpop.f32.mrb[30].mxu1 }
0x16fd   :  { %2631 = vtanh.f32 %v958_v39  ;;  %v2436_v42 = vpop.f32.mrb[31].mxu1 }
0x1707   :  { %v2632_v19 = vpop.eup %2631 }
0x1708   :  { %964 = vrot.lane.b32.xlu1 %v2632_v19, %s2716_s13  ;;  %v960_v43 = vmul.f32 0.5, %v2632_v19 }
0x170a   :  { %v961_v44 = vadd.f32 0.5, %v960_v43 }
0x170c   :  { %v962_v45 = vmul.f32 %v961_v44, %v904_v7 }
0x177a   :  { %v965_v1 = vpop.permute.xlu1 %964 }
0x177b   :  { %v967_v23 = vmul.f32 %v965_v1, %v961_v44 }
0x177d   :  { %969 = vrot.lane.b32.xlu1 %v967_v23, %s2721_s3 }
0x17ef   :  { %v970_v46 = vpop.permute.xlu1 %969 }
0x17f0   :  { %v972_v48 = vadd.f32 %v970_v46, %v962_v45 }
0x17f2   :  { %2633 = vtanh.f32 %v972_v48 }
0x17fc   :  { %v2634_v49 = vpop.eup %2633 }
0x17fd   :  { %975 = vrot.lane.b32.xlu1 %v2634_v49, %s2716_s13 }
0x1801   :  { %743 = vrot.lane.b32.xlu1 %v721_v51, %s2721_s3 }
0x186f   :  { %v976_v28 = vpop.permute.xlu1 %975 }
0x1870   :  { %v3057_v47 = vmul.f32 %v976_v28, %v961_v44 }
0x1872   :  { %v979_v53 = vpack.c.bf16 %v3057_v47, %v3057_v47 }
0x1873   :  { %v744_v54 = vpop.permute.xlu1 %743 }
0x1874   :  { %981 = vrot.lane.b32.xlu0 %v979_v53, %s2721_s3  ;;  %2418 = vmatmul.mubr.msk.bf16.gmra.mrb[20].mxu0 %vm177_vm2, %v744_v54 }
0x1875   :  { %2441 = vmatprep.mubr.msk.bf16.mxu0 %vm2719_vm1, %v2718_v10 }
0x18e6   :  { %v982_v55 = vpop.permute.xlu0 %981 }
0x18e7   :  { %2442 = vmatmul.mubr.msk.bf16.vlgmr.msra.gmra.mrb[24].mxu0 %vm177_vm2, %v982_v55 }
0x18e8   :  { %2454 = vmatpush3.bf16.msra.mxu0 %v2991_v3  ;;  %2457 = vmatprep.mubr.msk.bf16.mxu0 %vm2719_vm1, %v2718_v10 }
0x18e9   :  { %2455 = vmatprep.subr.bf16.mxu0 %v2718_v10 }
0x18ec   :  { %2456 = vmatpush3.bf16.msra.mxu0 %v2998_v52 }
0x18ed   :  { %2469 = vmatprep.subr.bf16.mxu0 %v2718_v10 }
0x1947   :  { %v3072_v30 = vpop.f32.mrb[20].mxu0 }
0x1948   :  { %v3074_v56 = vpop.f32.mrb[21].mxu0 }
0x1949   :  { %v3076_v59 = vpop.f32.mrb[22].mxu0  ;;  %v820_v19 = vadd.f32 %v3021_v57, %v3074_v56 }
0x194a   :  { %v3078_v60 = vpop.f32.mrb[23].mxu0 }
0x19ba   :  { %v1020_v63 = vpop.f32.mrb[24].mxu0 }
0x19bb   :  { %v1026_v0 = vadd.f32 %v1020_v63, %v812_v62  ;;  %v2443_v22 = vpop.f32.mrb[25].mxu0 }
0x19bc   :  { %v1023_v26 = vpop.f32.mrb[26].mxu0  ;;  %v823_v22 = vadd.f32 %v3021_v57, %v3078_v60 }
0x19bd   :  { %2635 = vtanh.f32 %v1026_v0  ;;  %v2444_v2 = vpop.f32.mrb[27].mxu0 }
0x19c7   :  { %v2636_v4 = vpop.eup %2635 }
0x19c8   :  { %1032 = vrot.lane.b32.xlu1 %v2636_v4, %s2716_s13  ;;  %v1028_v5 = vmul.f32 0.5, %v2636_v4 }
0x19ca   :  { %v1029_v6 = vadd.f32 0.5, %v1028_v5 }
0x19cc   :  { %v1030_v11 = vmul.f32 %v1029_v6, %v972_v48 }
0x1a3a   :  { %v1033_v8 = vpop.permute.xlu1 %1032 }
0x1a3b   :  { %v1035_v9 = vmul.f32 %v1033_v8, %v1029_v6 }
0x1a3d   :  { %1037 = vrot.lane.b32.xlu0 %v1035_v9, %s2721_s3 }
0x1aaf   :  { %v1038_v12 = vpop.permute.xlu0 %1037 }
0x1ab0   :  { %v1040_v7 = vadd.f32 %v1038_v12, %v1030_v11 }
0x1ab2   :  { %2637 = vtanh.f32 %v1040_v7 }
0x1abc   :  { %v2638_v58 = vpop.eup %2637 }
0x1abd   :  { %1043 = vrot.lane.b32.xlu1 %v2638_v58, %s2716_s13 }
0x1b2f   :  { %v1044_v13 = vpop.permute.xlu1 %1043 }
0x1b30   :  { %v3085_v14 = vmul.f32 %v1044_v13, %v1029_v6 }
0x1b32   :  { %v1047_v17 = vpack.c.bf16 %v3085_v14, %v3085_v14 }
0x1b34   :  { %1049 = vrot.lane.b32.xlu0 %v1047_v17, %s2721_s3 }
0x1ba6   :  { %v1050_v18 = vpop.permute.xlu0 %1049 }
0x1ba7   :  { %2450 = vmatmul.mubr.msk.bf16.vlgmr.msra.gmra.mrb[32].mxu1 %vm177_vm2, %v1050_v18 }
0x1ba8   :  { %2462 = vmatpush3.bf16.msra.mxu1 %v2991_v3  ;;  %2465 = vmatprep.mubr.msk.bf16.mxu1 %vm2719_vm1, %v2718_v10 }
0x1ba9   :  { %2463 = vmatprep.subr.bf16.mxu1 %v2718_v10 }
0x1bac   :  { %2464 = vmatpush3.bf16.msra.mxu1 %v2998_v52 }
0x1bad   :  { %2477 = vmatprep.subr.bf16.mxu1 %v2718_v10 }
0x1c7a   :  { %v1088_v21 = vpop.f32.mrb[32].mxu1 }
0x1c7b   :  { %v1094_v29 = vadd.f32 %v1088_v21, %v815_v20  ;;  %v2451_v25 = vpop.f32.mrb[33].mxu1  ;;  %v828_v21 = vadd.f32 %v3072_v30, %v3021_v57  ;;  %v2589_v30 = vld [vmem:[%s3390_s7] sm:$0xff]  }
0x1c7c   :  { %v1091_v27 = vpop.f32.mrb[34].mxu1 }
0x1c7d   :  { %2639 = vtanh.f32 %v1094_v29  ;;  %v2452_v24 = vpop.f32.mrb[35].mxu1 }
0x1c87   :  { %v2640_v31 = vpop.eup %2639 }
0x1c88   :  { %1100 = vrot.lane.b32.xlu1 %v2640_v31, %s2716_s13  ;;  %v1096_v32 = vmul.f32 0.5, %v2640_v31 }
0x1c8a   :  { %v1097_v33 = vadd.f32 0.5, %v1096_v32 }
0x1c8c   :  { %v1098_v36 = vmul.f32 %v1097_v33, %v1040_v7 }
0x1cfa   :  { %v1101_v34 = vpop.permute.xlu1 %1100 }
0x1cfb   :  { %v1103_v35 = vmul.f32 %v1101_v34, %v1097_v33 }
0x1cfd   :  { %1105 = vrot.lane.b32.xlu0 %v1103_v35, %s2721_s3 }
0x1d6f   :  { %v1106_v37 = vpop.permute.xlu0 %1105 }
0x1d70   :  { %v1108_v38 = vadd.f32 %v1106_v37, %v1098_v36 }
0x1d72   :  { %2641 = vtanh.f32 %v1108_v38 }
0x1d7c   :  { %v2642_v61 = vpop.eup %2641 }
0x1d7d   :  { %1111 = vrot.lane.b32.xlu1 %v2642_v61, %s2716_s13 }
0x1def   :  { %v1112_v39 = vpop.permute.xlu1 %1111 }
0x1df0   :  { %v3102_v40 = vmul.f32 %v1112_v39, %v1097_v33 }
0x1df2   :  { %v1115_v41 = vpack.c.bf16 %v3102_v40, %v3102_v40 }
0x1df4   :  { %1117 = vrot.lane.b32.xlu0 %v1115_v41, %s2721_s3  ;;  %v1387_v41 = vpack.c.bf16 %v3057_v47, %v3032_v15  ;;  %v1388_v15 = vpack.c.bf16 %v3102_v40, %v3085_v14  ;;  %v3171_v47 = vld [vmem:[%s3391_s8] sm:$0xff]   ;;  %v831_v40 = vadd.f32 %v3076_v59, %v3021_v57 }
0x1e66   :  { %v1118_v42 = vpop.permute.xlu0 %1117 }
0x1e67   :  { %2458 = vmatmul.mubr.msk.bf16.vlgmr.msra.gmra.mrb[28].mxu0 %vm177_vm2, %v1118_v42  ;;  %v2590_v42 = vld [vmem:[%s3390_s7 + $0x8] sm:$0xff]  }
0x1e68   :  { %2470 = vmatpush3.bf16.msra.mxu0 %v2991_v3  ;;  %2473 = vmatprep.mubr.msk.bf16.mxu0 %vm2719_vm1, %v2718_v10 }
0x1e69   :  { %2471 = vmatprep.subr.bf16.mxu0 %v2718_v10 }
0x1e6c   :  { %2472 = vmatpush3.bf16.msra.mxu0 %v2998_v52 }
0x1e6d   :  { %2485 = vmatprep.subr.bf16.mxu0 %v2589_v30 }
0x1f3a   :  { %v1156_v43 = vpop.f32.mrb[28].mxu0 }
0x1f3b   :  { %v1162_v44 = vadd.f32 %v1156_v43, %v820_v19  ;;  %v2459_v1 = vpop.f32.mrb[29].mxu0 }
0x1f3c   :  { %v1159_v23 = vpop.f32.mrb[30].mxu0 }
0x1f3d   :  { %2643 = vtanh.f32 %v1162_v44  ;;  %v2460_v45 = vpop.f32.mrb[31].mxu0 }
0x1f3e   :  { %v3178_v45 = vld [vmem:[%s3391_s8 + $0x8] sm:$0xff]  }
0x1f47   :  { %v2644_v46 = vpop.eup %2643 }
0x1f48   :  { %1168 = vrot.lane.b32.xlu1 %v2644_v46, %s2716_s13  ;;  %v1164_v48 = vmul.f32 0.5, %v2644_v46 }
0x1f4a   :  { %v1165_v50 = vadd.f32 0.5, %v1164_v48 }
0x1f4c   :  { %v1166_v28 = vmul.f32 %v1165_v50, %v1108_v38 }
0x1fba   :  { %v1169_v49 = vpop.permute.xlu1 %1168 }
0x1fbb   :  { %v1171_v51 = vmul.f32 %v1169_v49, %v1165_v50 }
0x1fbd   :  { %1173 = vrot.lane.b32.xlu0 %v1171_v51, %s2721_s3  ;;  %v3202_v51 = vld [vmem:[%s3392_s9] ss:$0 sm:$0xff] }
0x202f   :  { %v1174_v53 = vpop.permute.xlu0 %1173 }
0x2030   :  { %v1176_v54 = vadd.f32 %v1174_v53, %v1166_v28 }
0x2032   :  { %2645 = vtanh.f32 %v1176_v54 }
0x203c   :  { %v2646_v55 = vpop.eup %2645 }
0x203d   :  { %1179 = vrot.lane.b32.xlu1 %v2646_v55, %s2716_s13 }
0x20af   :  { %v1180_v56 = vpop.permute.xlu1 %1179 }
0x20b0   :  { %v3118_v62 = vmul.f32 %v1180_v56, %v1165_v50 }
0x20b2   :  { %v1183_v63 = vpack.c.bf16 %v3118_v62, %v3118_v62 }
0x20b4   :  { %1185 = vrot.lane.b32.xlu0 %v1183_v63, %s2721_s3 }
0x2126   :  { %v1186_v0 = vpop.permute.xlu0 %1185 }
0x2127   :  { %2466 = vmatmul.mubr.msk.bf16.vlgmr.msra.gmra.mrb[36].mxu1 %vm177_vm2, %v1186_v0 }
0x2128   :  { %2478 = vmatpush3.bf16.msra.mxu1 %v2991_v3  ;;  %2481 = vmatprep.mubr.msk.bf16.mxu1 %vm2719_vm1, %v2718_v10 }
0x2129   :  { %2479 = vmatprep.subr.bf16.mxu1 %v2718_v10 }
0x212c   :  { %2480 = vmatpush3.bf16.msra.mxu1 %v2998_v52 }
0x212d   :  { %2497 = vmatprep.subr.bf16.mxu1 %v2718_v10 }
0x21fa   :  { %v1224_v26 = vpop.f32.mrb[36].mxu1 }
0x21fb   :  { %v1230_v2 = vadd.f32 %v1224_v26, %v823_v22  ;;  %v2467_v4 = vpop.f32.mrb[37].mxu1 }
0x21fc   :  { %v1227_v5 = vpop.f32.mrb[38].mxu1 }
0x21fd   :  { %2647 = vtanh.f32 %v1230_v2  ;;  %v2468_v6 = vpop.f32.mrb[39].mxu1 }
0x2207   :  { %v2648_v8 = vpop.eup %2647 }
0x2208   :  { %1236 = vrot.lane.b32.xlu1 %v2648_v8, %s2716_s13  ;;  %v1232_v3 = vmul.f32 0.5, %v2648_v8 }
0x220a   :  { %v1233_v9 = vadd.f32 0.5, %v1232_v3 }
0x220c   :  { %v1234_v52 = vmul.f32 %v1233_v9, %v1176_v54 }
0x227a   :  { %v1237_v11 = vpop.permute.xlu1 %1236 }
0x227b   :  { %v1239_v12 = vmul.f32 %v1237_v11, %v1233_v9 }
0x227d   :  { %1241 = vrot.lane.b32.xlu0 %v1239_v12, %s2721_s3 }
0x22ef   :  { %v1242_v7 = vpop.permute.xlu0 %1241 }
0x22f0   :  { %v1244_v58 = vadd.f32 %v1242_v7, %v1234_v52 }
0x22f2   :  { %2649 = vtanh.f32 %v1244_v58 }
0x22fc   :  { %v2650_v60 = vpop.eup %2649 }
0x22fd   :  { %1247 = vrot.lane.b32.xlu1 %v2650_v60, %s2716_s13 }
0x236f   :  { %v1248_v13 = vpop.permute.xlu1 %1247 }
0x2370   :  { %v3135_v17 = vmul.f32 %v1248_v13, %v1233_v9 }
0x2372   :  { %v1251_v18 = vpack.c.bf16 %v3135_v17, %v3135_v17 }
0x2374   :  { %1253 = vrot.lane.b32.xlu0 %v1251_v18, %s2721_s3 }
0x23e6   :  { %v1254_v20 = vpop.permute.xlu0 %1253 }
0x23e7   :  { %2474 = vmatmul.mubr.msk.bf16.vlgmr.msra.gmra.mrb[32].mxu0 %vm177_vm2, %v1254_v20 }
0x23e8   :  { %2486 = vmatpush3.bf16.msra.mxu0 %v2589_v30 }
0x23e9   :  { %2487 = vmatprep.subr.bf16.mxu0 %v2590_v42 }
0x23ec   :  { %2488 = vmatpush3.bf16.msra.mxu0 %v2590_v42 }
0x23ed   :  { %2513 = vmatprep.subr.bf16.mxu0 %v2718_v10 }
0x24ba   :  { %v1292_v29 = vpop.f32.mrb[32].mxu0 }
0x24bb   :  { %v1298_v25 = vadd.f32 %v1292_v29, %v828_v21  ;;  %v2475_v27 = vpop.f32.mrb[33].mxu0 }
0x24bc   :  { %v1295_v24 = vpop.f32.mrb[34].mxu0 }
0x24bd   :  { %2651 = vtanh.f32 %v1298_v25  ;;  %v2476_v31 = vpop.f32.mrb[35].mxu0 }
0x24be   :  { %v1389_v31 = vpack.c.bf16 %v3135_v17, %v3118_v62 }
0x24c7   :  { %v2652_v32 = vpop.eup %2651 }
0x24c8   :  { %1304 = vrot.lane.b32.xlu1 %v2652_v32, %s2716_s13  ;;  %v1300_v33 = vmul.f32 0.5, %v2652_v32 }
0x24ca   :  { %v1301_v34 = vadd.f32 0.5, %v1300_v33 }
0x24cc   :  { %v1302_v37 = vmul.f32 %v1301_v34, %v1244_v58 }
0x253a   :  { %v1305_v35 = vpop.permute.xlu1 %1304 }
0x253b   :  { %v1307_v36 = vmul.f32 %v1305_v35, %v1301_v34 }
0x253d   :  { %1309 = vrot.lane.b32.xlu0 %v1307_v36, %s2721_s3 }
0x25af   :  { %v1310_v38 = vpop.permute.xlu0 %1309 }
0x25b0   :  { %v3145_v61 = vadd.f32 %v1310_v38, %v1302_v37 }
0x25b2   :  { %2653 = vtanh.f32 %v3145_v61 }
0x25bc   :  { %v2654_v39 = vpop.eup %2653 }
0x25bd   :  { %1315 = vrot.lane.b32.xlu1 %v2654_v39, %s2716_s13 }
0x25c1   :  { %1406 = vrot.lane.b32.xlu1 %v1387_v41, %s2721_s3 }
0x262f   :  { %v1316_v19 = vpop.permute.xlu1 %1315 }
0x2630   :  { %v3159_v43 = vmul.f32 %v1316_v19, %v1301_v34 }
0x2632   :  { %v1319_v44 = vpack.c.bf16 %v3159_v43, %v3159_v43 }
0x2633   :  { %v1407_v1 = vpop.permute.xlu1 %1406 }
0x2634   :  { %1321 = vrot.lane.b32.xlu0 %v1319_v44, %s2721_s3  ;;  %2489 = vmatprep.mubr.msk.bf16.mxu0 %vm177_vm2, %v1407_v1 }
0x2638   :  { %1408 = vrot.lane.b32.xlu0 %v1388_v15, %s2721_s3 }
0x26a6   :  { %v1322_v23 = vpop.permute.xlu0 %1321 }
0x26a7   :  { %2482 = vmatmul.mubr.msk.bf16.vlgmr.msra.gmra.mrb[40].mxu1 %vm177_vm2, %v1322_v23 }
0x26a8   :  { %2498 = vmatpush3.bf16.msra.mxu1 %v3171_v47  ;;  %2501 = vmatprep.mubr.msk.bf16.mxu1 %vm2719_vm1, %v2718_v10 }
0x26a9   :  { %2499 = vmatprep.subr.bf16.mxu1 %v2718_v10 }
0x26aa   :  { %v1409_v14 = vpop.permute.xlu0 %1408 }
0x26ab   :  { %2490 = vmatmul.mubr.msk.bf16.vlgmr.msra.gmra.mrb[36].mxu0 %vm177_vm2, %v1409_v14 }
0x26ac   :  { %2500 = vmatpush3.bf16.msra.mxu1 %v3178_v45  ;;  %2514 = vmatpush3.bf16.msra.mxu0 %v3171_v47 }
0x26ad   :  { %2505 = vmatprep.subr.bf16.mxu1 %v2718_v10  ;;  %2515 = vmatprep.subr.bf16.mxu0 %v2718_v10 }
0x26af   :  { %2502 = vmatmul.mubr.bf16.vlgmr.msra.gmra.mrb[44].mxu1 %v2720_v16 }
0x26b0   :  { %2506 = vmatpush3.bf16.msra.mxu1 %v3171_v47  ;;  %2509 = vmatprep.mubr.msk.bf16.mxu1 %vm2719_vm1, %v2718_v10 }
0x26b1   :  { %2507 = vmatprep.subr.bf16.mxu1 %v2718_v10  ;;  %2516 = vmatpush3.bf16.msra.mxu0 %v3178_v45 }
0x26b2   :  { %2529 = vmatprep.subr.bf16.mxu0 %v2718_v10 }
0x26b4   :  { %2508 = vmatpush3.bf16.msra.mxu1 %v3178_v45 }
0x26b5   :  { %2521 = vmatprep.subr.bf16.mxu1 %v2718_v10 }
0x277a   :  { %v1360_v46 = vpop.f32.mrb[40].mxu1 }
0x277b   :  { %v1366_v16 = vadd.f32 %v1360_v46, %v831_v40  ;;  %v2483_v48 = vpop.f32.mrb[41].mxu1 }
0x277c   :  { %v1363_v50 = vpop.f32.mrb[42].mxu1 }
0x277d   :  { %v2484_v49 = vpop.f32.mrb[43].mxu1 }
0x277e   :  { %v3204_v28 = vpop.f32.mrb[36].mxu0 }
0x277f   :  { %v1472_v53 = vpop.f32.mrb[37].mxu0 }
0x2780   :  { %v1473_v54 = vadd.f32 %v3202_v51, %v1472_v53  ;;  %v3207_v55 = vpop.f32.mrb[38].mxu0 }
0x2781   :  { %v1475_v56 = vpop.f32.mrb[39].mxu0 }
0x2782   :  { %v1553_v63 = vpop.f32.mrb[44].mxu1  ;;  %v1476_v34 = vadd.f32 %v3202_v51, %v1475_v56 }
0x2783   :  { %v1559_v57 = vadd.f32 %v1553_v63, %v1473_v54  ;;  %v2503_v59 = vpop.f32.mrb[45].mxu1  ;;  %v1481_v54 = vadd.f32 %v3204_v28, %v3202_v51 }
0x2784   :  { %v1556_v0 = vpop.f32.mrb[46].mxu1 }
0x2785   :  { %2655 = vtanh.f32 %v1559_v57  ;;  %v2504_v22 = vpop.f32.mrb[47].mxu1 }
0x278f   :  { %v2656_v26 = vpop.eup %2655 }
0x2790   :  { %1565 = vrot.lane.b32.xlu1 %v2656_v26, %s2716_s13  ;;  %v1561_v2 = vmul.f32 0.5, %v2656_v26 }
0x2792   :  { %v1562_v4 = vadd.f32 0.5, %v1561_v2 }
0x2794   :  { %v1563_v8 = vmul.f32 0.0, %v1562_v4 }
0x2802   :  { %v1566_v5 = vpop.permute.xlu1 %1565 }
0x2803   :  { %v1568_v6 = vmul.f32 %v1566_v5, %v1562_v4 }
0x2805   :  { %1570 = vrot.lane.b32.xlu0 %v1568_v6, %s2721_s3 }
0x2877   :  { %v1571_v3 = vpop.permute.xlu0 %1570 }
0x2878   :  { %v1573_v9 = vadd.f32 %v1571_v3, %v1563_v8 }
0x287a   :  { %2657 = vtanh.f32 %v1573_v9 }
0x287b   :  { %2659 = vtanh.f32 %v1366_v16 }
0x2884   :  { %v2658_v11 = vpop.eup %2657 }
0x2885   :  { %1576 = vrot.lane.b32.xlu1 %v2658_v11, %s2716_s13  ;;  %v2660_v12 = vpop.eup %2659 }
0x2886   :  { %v1368_v52 = vmul.f32 0.5, %v2660_v12 }
0x2888   :  { %v1369_v13 = vadd.f32 0.5, %v1368_v52 }
0x2889   :  { %1372 = vrot.lane.b32.xlu1 %v2660_v12, %s2716_s13 }
0x288a   :  { %v1370_v29 = vmul.f32 %v1369_v13, %v3145_v61 }
0x28f7   :  { %v1577_v7 = vpop.permute.xlu1 %1576 }
0x28f8   :  { %v3213_v58 = vmul.f32 %v1577_v7, %v1562_v4  ;;  %v1484_v7 = vadd.f32 %v3207_v55, %v3202_v51 }
0x28fa   :  { %v1580_v60 = vpack.c.bf16 %v3213_v58, %v3213_v58 }
0x28fb   :  { %v1373_v18 = vpop.permute.xlu1 %1372 }
0x28fc   :  { %v1375_v20 = vmul.f32 %v1373_v18, %v1369_v13  ;;  %1582 = vrot.lane.b32.xlu0 %v1580_v60, %s2721_s3 }
0x28fe   :  { %1377 = vrot.lane.b32.xlu1 %v1375_v20, %s2721_s3 }
0x296e   :  { %v1583_v21 = vpop.permute.xlu0 %1582 }
0x296f   :  { %2510 = vmatmul.mubr.msk.bf16.vlgmr.msra.gmra.mrb[48].mxu1 %vm177_vm2, %v1583_v21 }
0x2970   :  { %v1378_v25 = vpop.permute.xlu1 %1377  ;;  %2522 = vmatpush3.bf16.msra.mxu1 %v3171_v47  ;;  %2525 = vmatprep.mubr.msk.bf16.mxu1 %vm2719_vm1, %v2718_v10 }
0x2971   :  { %v1380_v27 = vadd.f32 %v1378_v25, %v1370_v29  ;;  %2523 = vmatprep.subr.bf16.mxu1 %v2718_v10 }
0x2973   :  { %2661 = vtanh.f32 %v1380_v27 }
0x2974   :  { %2524 = vmatpush3.bf16.msra.mxu1 %v3178_v45 }
0x2975   :  { %2537 = vmatprep.subr.bf16.mxu1 %v2718_v10 }
0x297d   :  { %v2662_v24 = vpop.eup %2661 }
0x297e   :  { %1383 = vrot.lane.b32.xlu1 %v2662_v24, %s2716_s13 }
0x2982   :  { %1410 = vrot.lane.b32.xlu1 %v1389_v31, %s2721_s3 }
0x29f0   :  { %v1384_v32 = vpop.permute.xlu1 %1383 }
0x29f1   :  { %v1386_v1 = vmul.f32 %v1384_v32, %v1369_v13 }
0x29f3   :  { %v1390_v23 = vpack.c.bf16 %v1386_v1, %v3159_v43 }
0x29f4   :  { %v1411_v33 = vpop.permute.xlu1 %1410 }
0x29f5   :  { %2493 = vmatprep.mubr.msk.bf16.mxu0 %vm177_vm2, %v1411_v33 }
0x2a42   :  { %v1621_v35 = vpop.f32.mrb[48].mxu1 }
0x2a43   :  { %v1627_v36 = vadd.f32 %v1621_v35, %v1476_v34  ;;  %v2511_v37 = vpop.f32.mrb[49].mxu1 }
0x2a44   :  { %v1624_v38 = vpop.f32.mrb[50].mxu1 }
0x2a45   :  { %2663 = vtanh.f32 %v1627_v36  ;;  %v2512_v61 = vpop.f32.mrb[51].mxu1 }
0x2a4f   :  { %v2664_v30 = vpop.eup %2663 }
0x2a50   :  { %1633 = vrot.lane.b32.xlu0 %v2664_v30, %s2716_s13  ;;  %v1629_v39 = vmul.f32 0.5, %v2664_v30 }
0x2a52   :  { %v1630_v41 = vadd.f32 0.5, %v1629_v39 }
0x2a54   :  { %v1631_v42 = vmul.f32 %v1630_v41, %v1573_v9 }
0x2ac2   :  { %v1634_v62 = vpop.permute.xlu0 %1633 }
0x2ac3   :  { %v1636_v17 = vmul.f32 %v1634_v62, %v1630_v41 }
0x2ac5   :  { %1638 = vrot.lane.b32.xlu0 %v1636_v17, %s2721_s3 }
0x2b37   :  { %v1639_v19 = vpop.permute.xlu0 %1638 }
0x2b38   :  { %v1641_v44 = vadd.f32 %v1639_v19, %v1631_v42 }
0x2b3a   :  { %2665 = vtanh.f32 %v1641_v44 }
0x2b44   :  { %v2666_v15 = vpop.eup %2665 }
0x2b45   :  { %1644 = vrot.lane.b32.xlu0 %v2666_v15, %s2716_s13 }
0x2b49   :  { %1412 = vrot.lane.b32.xlu0 %v1390_v23, %s2721_s3 }
0x2bb7   :  { %v1645_v14 = vpop.permute.xlu0 %1644 }
0x2bb8   :  { %v3238_v40 = vmul.f32 %v1645_v14, %v1630_v41 }
0x2bba   :  { %v1648_v46 = vpack.c.bf16 %v3238_v40, %v3238_v40 }
0x2bbb   :  { %v1413_v16 = vpop.permute.xlu0 %1412 }
0x2bbc   :  { %1650 = vrot.lane.b32.xlu1 %v1648_v46, %s2721_s3  ;;  %2494 = vmatmul.mubr.msk.bf16.gmra.mrb[40].mxu0 %vm177_vm2, %v1413_v16 }
0x2bbd   :  { %2517 = vmatprep.mubr.msk.bf16.mxu0 %vm2719_vm1, %v2718_v10 }
0x2c2e   :  { %v1651_v48 = vpop.permute.xlu1 %1650 }
0x2c2f   :  { %2518 = vmatmul.mubr.msk.bf16.vlgmr.msra.gmra.mrb[44].mxu0 %vm177_vm2, %v1651_v48 }
0x2c30   :  { %2530 = vmatpush3.bf16.msra.mxu0 %v3171_v47  ;;  %2533 = vmatprep.mubr.msk.bf16.mxu0 %vm2719_vm1, %v2718_v10 }
0x2c31   :  { %2531 = vmatprep.subr.bf16.mxu0 %v2718_v10 }
0x2c34   :  { %2532 = vmatpush3.bf16.msra.mxu0 %v3178_v45 }
0x2c35   :  { %2545 = vmatprep.subr.bf16.mxu0 %v2718_v10 }
0x2c8f   :  { %v3253_v43 = vpop.f32.mrb[40].mxu0 }
0x2c90   :  { %v3255_v50 = vpop.f32.mrb[41].mxu0 }
0x2c91   :  { %v3257_v49 = vpop.f32.mrb[42].mxu0  ;;  %v1489_v61 = vadd.f32 %v3202_v51, %v3255_v50 }
0x2c92   :  { %v3259_v53 = vpop.f32.mrb[43].mxu0 }
0x2d02   :  { %v1689_v56 = vpop.f32.mrb[44].mxu0 }
0x2d03   :  { %v1695_v63 = vadd.f32 %v1689_v56, %v1481_v54  ;;  %v2519_v57 = vpop.f32.mrb[45].mxu0 }
0x2d04   :  { %v1692_v59 = vpop.f32.mrb[46].mxu0 }
0x2d05   :  { %2667 = vtanh.f32 %v1695_v63  ;;  %v2520_v0 = vpop.f32.mrb[47].mxu0  ;;  %v1492_v63 = vadd.f32 %v3202_v51, %v3259_v53 }
0x2d0f   :  { %v2668_v22 = vpop.eup %2667 }
0x2d10   :  { %1701 = vrot.lane.b32.xlu0 %v2668_v22, %s2716_s13  ;;  %v1697_v26 = vmul.f32 0.5, %v2668_v22 }
0x2d12   :  { %v1698_v2 = vadd.f32 0.5, %v1697_v26 }
0x2d14   :  { %v1699_v6 = vmul.f32 %v1698_v2, %v1641_v44 }
0x2d82   :  { %v1702_v4 = vpop.permute.xlu0 %1701 }
0x2d83   :  { %v1704_v5 = vmul.f32 %v1702_v4, %v1698_v2 }
0x2d85   :  { %1706 = vrot.lane.b32.xlu1 %v1704_v5, %s2721_s3 }
0x2df7   :  { %v1707_v8 = vpop.permute.xlu1 %1706 }
0x2df8   :  { %v1709_v3 = vadd.f32 %v1707_v8, %v1699_v6 }
0x2dfa   :  { %2669 = vtanh.f32 %v1709_v3 }
0x2e04   :  { %v2670_v28 = vpop.eup %2669 }
0x2e05   :  { %1712 = vrot.lane.b32.xlu0 %v2670_v28, %s2716_s13 }
0x2e77   :  { %v1713_v9 = vpop.permute.xlu0 %1712 }
0x2e78   :  { %v3266_v11 = vmul.f32 %v1713_v9, %v1698_v2 }
0x2e7a   :  { %v1716_v12 = vpack.c.bf16 %v3266_v11, %v3266_v11 }
0x2e7c   :  { %1718 = vrot.lane.b32.xlu1 %v1716_v12, %s2721_s3 }
0x2eee   :  { %v1719_v52 = vpop.permute.xlu1 %1718 }
0x2eef   :  { %2526 = vmatmul.mubr.msk.bf16.vlgmr.msra.gmra.mrb[52].mxu1 %vm177_vm2, %v1719_v52  ;;  %v1497_v52 = vadd.f32 %v3253_v43, %v3202_v51 }
0x2ef0   :  { %2538 = vmatpush3.bf16.msra.mxu1 %v3171_v47  ;;  %2541 = vmatprep.mubr.msk.bf16.mxu1 %vm2719_vm1, %v2718_v10 }
0x2ef1   :  { %2539 = vmatprep.subr.bf16.mxu1 %v2718_v10 }
0x2ef4   :  { %2540 = vmatpush3.bf16.msra.mxu1 %v3178_v45 }
0x2ef5   :  { %2553 = vmatprep.subr.bf16.mxu1 %v2718_v10 }
0x2fc2   :  { %v1757_v60 = vpop.f32.mrb[52].mxu1 }
0x2fc3   :  { %v1763_v13 = vadd.f32 %v1757_v60, %v1484_v7  ;;  %v2527_v18 = vpop.f32.mrb[53].mxu1 }
0x2fc4   :  { %v1760_v20 = vpop.f32.mrb[54].mxu1 }
0x2fc5   :  { %2671 = vtanh.f32 %v1763_v13  ;;  %v2528_v21 = vpop.f32.mrb[55].mxu1 }
0x2fcf   :  { %v2672_v29 = vpop.eup %2671 }
0x2fd0   :  { %1769 = vrot.lane.b32.xlu0 %v2672_v29, %s2716_s13  ;;  %v1765_v25 = vmul.f32 0.5, %v2672_v29 }
0x2fd2   :  { %v1766_v27 = vadd.f32 0.5, %v1765_v25 }
0x2fd4   :  { %v1767_v32 = vmul.f32 %v1766_v27, %v1709_v3 }
0x3042   :  { %v1770_v24 = vpop.permute.xlu0 %1769 }
0x3043   :  { %v1772_v31 = vmul.f32 %v1770_v24, %v1766_v27 }
0x3045   :  { %1774 = vrot.lane.b32.xlu1 %v1772_v31, %s2721_s3 }
0x30b7   :  { %v1775_v33 = vpop.permute.xlu1 %1774 }
0x30b8   :  { %v1777_v34 = vadd.f32 %v1775_v33, %v1767_v32 }
0x30ba   :  { %2673 = vtanh.f32 %v1777_v34 }
0x30c4   :  { %v2674_v55 = vpop.eup %2673 }
0x30c5   :  { %1780 = vrot.lane.b32.xlu0 %v2674_v55, %s2716_s13 }
0x3137   :  { %v1781_v35 = vpop.permute.xlu0 %1780 }
0x3138   :  { %v3283_v36 = vmul.f32 %v1781_v35, %v1766_v27 }
0x313a   :  { %v1784_v37 = vpack.c.bf16 %v3283_v36, %v3283_v36 }
0x313c   :  { %1786 = vrot.lane.b32.xlu1 %v1784_v37, %s2721_s3 }
0x31ae   :  { %v1787_v38 = vpop.permute.xlu1 %1786 }
0x31af   :  { %2534 = vmatmul.mubr.msk.bf16.vlgmr.msra.gmra.mrb[48].mxu0 %vm177_vm2, %v1787_v38  ;;  %v1500_v38 = vadd.f32 %v3257_v49, %v3202_v51  ;;  %v2593_v51 = vld [vmem:[%s3393_s10] sm:$0xff]  }
0x31b0   :  { %2546 = vmatpush3.bf16.msra.mxu0 %v3171_v47  ;;  %2549 = vmatprep.mubr.msk.bf16.mxu0 %vm2719_vm1, %v2718_v10 }
0x31b1   :  { %2547 = vmatprep.subr.bf16.mxu0 %v2718_v10 }
0x31b4   :  { %2548 = vmatpush3.bf16.msra.mxu0 %v3178_v45 }
0x31b5   :  { %2561 = vmatprep.subr.bf16.mxu0 %v2593_v51 }
0x3282   :  { %v1825_v30 = vpop.f32.mrb[48].mxu0 }
0x3283   :  { %v1831_v39 = vadd.f32 %v1825_v30, %v1489_v61  ;;  %v2535_v41 = vpop.f32.mrb[49].mxu0 }
0x3284   :  { %v1828_v62 = vpop.f32.mrb[50].mxu0 }
0x3285   :  { %2675 = vtanh.f32 %v1831_v39  ;;  %v2536_v17 = vpop.f32.mrb[51].mxu0 }
0x328f   :  { %v2676_v42 = vpop.eup %2675 }
0x3290   :  { %1837 = vrot.lane.b32.xlu0 %v2676_v42, %s2716_s13  ;;  %v1833_v19 = vmul.f32 0.5, %v2676_v42 }
0x3292   :  { %v1834_v44 = vadd.f32 0.5, %v1833_v19 }
0x3294   :  { %v1835_v23 = vmul.f32 %v1834_v44, %v1777_v34 }
0x3302   :  { %v1838_v1 = vpop.permute.xlu0 %1837 }
0x3303   :  { %v1840_v15 = vmul.f32 %v1838_v1, %v1834_v44 }
0x3305   :  { %1842 = vrot.lane.b32.xlu1 %v1840_v15, %s2721_s3  ;;  %v2056_v15 = vpack.c.bf16 %v3238_v40, %v3213_v58 }
0x3377   :  { %v1843_v14 = vpop.permute.xlu1 %1842 }
0x3378   :  { %v1845_v46 = vadd.f32 %v1843_v14, %v1835_v23  ;;  %v2594_v14 = vld [vmem:[%s3393_s10 + $0x8] sm:$0xff]  }
0x337a   :  { %2677 = vtanh.f32 %v1845_v46 }
0x3384   :  { %v2678_v16 = vpop.eup %2677 }
0x3385   :  { %1848 = vrot.lane.b32.xlu0 %v2678_v16, %s2716_s13 }
0x33f7   :  { %v1849_v48 = vpop.permute.xlu0 %1848 }
0x33f8   :  { %v3299_v50 = vmul.f32 %v1849_v48, %v1834_v44  ;;  %v2057_v48 = vpack.c.bf16 %v3283_v36, %v3266_v11  ;;  %v2233_v11 = vld [vmem:[%s3394_s11] ss:$0 sm:$0xff] }
0x33fa   :  { %v1852_v54 = vpack.c.bf16 %v3299_v50, %v3299_v50 }
0x33fc   :  { %1854 = vrot.lane.b32.xlu1 %v1852_v54, %s2721_s3 }
0x346e   :  { %v1855_v56 = vpop.permute.xlu1 %1854 }
0x346f   :  { %2542 = vmatmul.mubr.msk.bf16.vlgmr.msra.gmra.mrb[56].mxu1 %vm177_vm2, %v1855_v56 }
0x3470   :  { %2554 = vmatpush3.bf16.msra.mxu1 %v3171_v47  ;;  %2557 = vmatprep.mubr.msk.bf16.mxu1 %vm2719_vm1, %v2718_v10 }
0x3471   :  { %2555 = vmatprep.subr.bf16.mxu1 %v2718_v10 }
0x3474   :  { %2556 = vmatpush3.bf16.msra.mxu1 %v3178_v45 }
0x3542   :  { %v1893_v57 = vpop.f32.mrb[56].mxu1 }
0x3543   :  { %v1899_v59 = vadd.f32 %v1893_v57, %v1492_v63  ;;  %v2543_v0 = vpop.f32.mrb[57].mxu1 }
0x3544   :  { %v1896_v22 = vpop.f32.mrb[58].mxu1 }
0x3545   :  { %2679 = vtanh.f32 %v1899_v59  ;;  %v2544_v26 = vpop.f32.mrb[59].mxu1 }
0x354f   :  { %v2680_v2 = vpop.eup %2679 }
0x3550   :  { %1905 = vrot.lane.b32.xlu0 %v2680_v2, %s2716_s13  ;;  %v1901_v47 = vmul.f32 0.5, %v2680_v2 }
0x3552   :  { %v1902_v4 = vadd.f32 0.5, %v1901_v47 }
0x3554   :  { %v1903_v10 = vmul.f32 %v1902_v4, %v1845_v46 }
0x35c2   :  { %v1906_v5 = vpop.permute.xlu0 %1905 }
0x35c3   :  { %v1908_v6 = vmul.f32 %v1906_v5, %v1902_v4 }
0x35c5   :  { %1910 = vrot.lane.b32.xlu1 %v1908_v6, %s2721_s3 }
0x3637   :  { %v1911_v45 = vpop.permute.xlu1 %1910 }
0x3638   :  { %v1913_v8 = vadd.f32 %v1911_v45, %v1903_v10 }
0x363a   :  { %2681 = vtanh.f32 %v1913_v8 }
0x3644   :  { %v2682_v53 = vpop.eup %2681 }
0x3645   :  { %1916 = vrot.lane.b32.xlu0 %v2682_v53, %s2716_s13 }
0x36b7   :  { %v1917_v3 = vpop.permute.xlu0 %1916 }
0x36b8   :  { %v1919_v28 = vmul.f32 %v1917_v3, %v1902_v4 }
0x36ba   :  { %v1920_v9 = vpack.c.bf16 %v1919_v28, %v1919_v28  ;;  %v2058_v49 = vpack.c.bf16 %v1919_v28, %v3299_v50 }
0x36bc   :  { %1922 = vrot.lane.b32.xlu1 %v1920_v9, %s2721_s3 }
0x372e   :  { %v1923_v12 = vpop.permute.xlu1 %1922 }
0x372f   :  { %2550 = vmatmul.mubr.msk.bf16.vlgmr.msra.gmra.mrb[52].mxu0 %vm177_vm2, %v1923_v12 }
0x3730   :  { %2562 = vmatpush3.bf16.msra.mxu0 %v2593_v51 }
0x3731   :  { %2563 = vmatprep.subr.bf16.mxu0 %v2594_v14 }
0x3734   :  { %2564 = vmatpush3.bf16.msra.mxu0 %v2594_v14 }
0x3802   :  { %v1961_v7 = vpop.f32.mrb[52].mxu0 }
0x3803   :  { %v1967_v60 = vadd.f32 %v1961_v7, %v1497_v52  ;;  %v2551_v13 = vpop.f32.mrb[53].mxu0 }
0x3804   :  { %v1964_v18 = vpop.f32.mrb[54].mxu0 }
0x3805   :  { %2683 = vtanh.f32 %v1967_v60  ;;  %v2552_v20 = vpop.f32.mrb[55].mxu0 }
0x380f   :  { %v2684_v21 = vpop.eup %2683 }
0x3810   :  { %1973 = vrot.lane.b32.xlu0 %v2684_v21, %s2716_s13  ;;  %v1969_v29 = vmul.f32 0.5, %v2684_v21 }
0x3812   :  { %v1970_v25 = vadd.f32 0.5, %v1969_v29 }
0x3814   :  { %v1971_v31 = vmul.f32 %v1970_v25, %v1913_v8 }
0x3882   :  { %v1974_v27 = vpop.permute.xlu0 %1973 }
0x3883   :  { %v1976_v24 = vmul.f32 %v1974_v27, %v1970_v25 }
0x3885   :  { %1978 = vrot.lane.b32.xlu1 %v1976_v24, %s2721_s3 }
0x38f7   :  { %v1979_v32 = vpop.permute.xlu1 %1978 }
0x38f8   :  { %v1981_v33 = vadd.f32 %v1979_v32, %v1971_v31 }
0x38fa   :  { %2685 = vtanh.f32 %v1981_v33 }
0x3904   :  { %v2686_v43 = vpop.eup %2685 }
0x3905   :  { %1984 = vrot.lane.b32.xlu0 %v2686_v43, %s2716_s13 }
0x3977   :  { %v1985_v34 = vpop.permute.xlu0 %1984 }
0x3978   :  { %v1987_v55 = vmul.f32 %v1985_v34, %v1970_v25 }
0x397a   :  { %v1988_v35 = vpack.c.bf16 %v1987_v55, %v1987_v55 }
0x397c   :  { %1990 = vrot.lane.b32.xlu1 %v1988_v35, %s2721_s3 }
0x39ee   :  { %v1991_v37 = vpop.permute.xlu1 %1990 }
0x39ef   :  { %2558 = vmatmul.mubr.msk.bf16.vlgmr.msra.gmra.mrb[60].mxu1 %vm177_vm2, %v1991_v37 }
0x3ac2   :  { %v2029_v61 = vpop.f32.mrb[60].mxu1 }
0x3ac3   :  { %v2035_v30 = vadd.f32 %v2029_v61, %v1500_v38  ;;  %v2559_v39 = vpop.f32.mrb[61].mxu1 }
0x3ac4   :  { %v2032_v41 = vpop.f32.mrb[62].mxu1 }
0x3ac5   :  { %2687 = vtanh.f32 %v2035_v30  ;;  %v2560_v62 = vpop.f32.mrb[63].mxu1 }
0x3acf   :  { %v2688_v17 = vpop.eup %2687 }
0x3ad0   :  { %2041 = vrot.lane.b32.xlu0 %v2688_v17, %s2716_s13  ;;  %v2037_v42 = vmul.f32 0.5, %v2688_v17 }
0x3ad2   :  { %v2038_v19 = vadd.f32 0.5, %v2037_v42 }
0x3ad4   :  { %v2039_v23 = vmul.f32 %v2038_v19, %v1981_v33 }
0x3b42   :  { %v2042_v44 = vpop.permute.xlu0 %2041 }
0x3b43   :  { %v2044_v1 = vmul.f32 %v2042_v44, %v2038_v19 }
0x3b45   :  { %2046 = vrot.lane.b32.xlu1 %v2044_v1, %s2721_s3 }
0x3b49   :  { %2075 = vrot.lane.b32.xlu1 %v2056_v15, %s2721_s3 }
0x3b4d   :  { %2079 = vrot.lane.b32.xlu1 %v2058_v49, %s2721_s3 }
0x3bb7   :  { %v2047_v46 = vpop.permute.xlu1 %2046 }
0x3bb8   :  { %v2049_v16 = vadd.f32 %v2047_v46, %v2039_v23 }
0x3bba   :  { %2689 = vtanh.f32 %v2049_v16 }
0x3bbb   :  { %v2076_v58 = vpop.permute.xlu1 %2075 }
0x3bbc   :  { %2565 = vmatprep.mubr.msk.bf16.mxu0 %vm177_vm2, %v2076_v58 }
0x3bbf   :  { %v2080_v57 = vpop.permute.xlu1 %2079 }
0x3bc4   :  { %v2690_v40 = vpop.eup %2689 }
0x3bc5   :  { %2052 = vrot.lane.b32.xlu0 %v2690_v40, %s2716_s13 }
0x3bc9   :  { %2077 = vrot.lane.b32.xlu0 %v2057_v48, %s2721_s3 }
0x3c37   :  { %v2053_v50 = vpop.permute.xlu0 %2052 }
0x3c38   :  { %v2055_v54 = vmul.f32 %v2053_v50, %v2038_v19 }
0x3c3a   :  { %v2059_v56 = vpack.c.bf16 %v2055_v54, %v1987_v55 }
0x3c3b   :  { %v2078_v63 = vpop.permute.xlu0 %2077 }
0x3c3c   :  { %2081 = vrot.lane.b32.xlu0 %v2059_v56, %s2721_s3  ;;  %2566 = vmatmul.mubr.msk.bf16.vlgmr.msra.gmra.mrb[56].mxu0 %vm177_vm2, %v2078_v63 }
0x3c3d   :  { %2569 = vmatprep.mubr.msk.bf16.mxu0 %vm177_vm2, %v2080_v57 }
0x3cae   :  { %v2082_v59 = vpop.permute.xlu0 %2081 }
0x3caf   :  { %2570 = vmatmul.mubr.msk.bf16.gmra.mrb[60].mxu0 %vm177_vm2, %v2082_v59 }
0x3d0f   :  { %v2567_v36 = vpop.f32.mrb[56].mxu0 }
0x3d10   :  { %v2150_v0 = vadd.f32 %v2567_v36, %v2233_v11  ;;  %v2141_v22 = vpop.f32.mrb[57].mxu0 }
0x3d11   :  { %v2142_v26 = vadd.f32 %v2233_v11, %v2141_v22  ;;  %v2568_v2 = vpop.f32.mrb[58].mxu0 }
0x3d12   :  { %2175 = vst.msk [vmem:[%s3395_s12 + $0x10] sm:$0xff] %vm2172_vm3, %v2150_v0  ;;  %v2153_v47 = vadd.f32 %v2568_v2, %v2233_v11  ;;  %v2144_v4 = vpop.f32.mrb[59].mxu0 }
0x3d13   :  { %2173 = vst.msk [vmem:[%s3395_s12] sm:$0xff] %vm2172_vm3, %v2142_v26  ;;  %v2145_v5 = vadd.f32 %v2233_v11, %v2144_v4 }
0x3d14   :  { %2176 = vst.msk [vmem:[%s3395_s12 + $0x18] sm:$0xff] %vm2172_vm3, %v2153_v47 }
0x3d15   :  { %2174 = vst.msk [vmem:[%s3395_s12 + $0x8] sm:$0xff] %vm2172_vm3, %v2145_v5 }
0x3d82   :  { %v2571_v6 = vpop.f32.mrb[60].mxu0 }
0x3d83   :  { %v2166_v10 = vadd.f32 %v2571_v6, %v2233_v11  ;;  %v2157_v45 = vpop.f32.mrb[61].mxu0 }
0x3d84   :  { %v2158_v8 = vadd.f32 %v2233_v11, %v2157_v45  ;;  %v2572_v53 = vpop.f32.mrb[62].mxu0 }
0x3d85   :  { %2179 = vst.msk [vmem:[%s3395_s12 + $0x30] sm:$0xff] %vm2172_vm3, %v2166_v10  ;;  %v2169_v3 = vadd.f32 %v2572_v53, %v2233_v11  ;;  %v2160_v28 = vpop.f32.mrb[63].mxu0 }
0x3d86   :  { %2177 = vst.msk [vmem:[%s3395_s12 + $0x20] sm:$0xff] %vm2172_vm3, %v2158_v8  ;;  %v2161_v9 = vadd.f32 %v2233_v11, %v2160_v28 }
0x3d87   :  { %2180 = vst.msk [vmem:[%s3395_s12 + $0x38] sm:$0xff] %vm2172_vm3, %v2169_v3 }
0x3d88   :  { %2178 = vst.msk [vmem:[%s3395_s12 + $0x28] sm:$0xff] %vm2172_vm3, %v2161_v9 }
0x3d89   :  { %2185 = vsyncpa [#allocation3], 1 }

</bundles_post_ra>
